<compile_context>
chip_gen: v7x
topology: tpu7x:2x2x1
jax: 0.10.0
libtpu: 0.0.40
codegen_flags: <defaults>
</compile_context>

<pallas_src>
import jax
import jax.numpy as jnp
import numpy as np
from jax.experimental import pallas as pl
from jax.experimental.pallas import tpu as pltpu


def _round_up(n, m):
    return ((n + m - 1) // m) * m


def _tiles_per_chip():
    """2 independent batch tiles on dual-TC v7x, 1 on single-TC v5e/v6e."""
    try:
        kind = jax.devices()[0].device_kind.lower()
        if "v7" in kind:
            return 2
    except Exception:
        pass
    return 1


def mlp_kernel(x_ref, w1_ref, b1_ref, w2_ref, b2_ref, w3_ref, b3_ref, o_ref):
    in_dim = x_ref.shape[1]

    # ---- Layer 1: Linear(in_dim -> H1) + ReLU on the VPU ---------------------
    # in_dim is tiny (2): a static-unrolled broadcasted FMA chain avoids padding
    # the MXU contraction dim 2 -> 128.  Slices are read straight from the ref
    # (no (TB, in_dim) lane-sparse materialization -> less vreg pressure).
    h1 = b1_ref[...] + x_ref[:, 0:1] * w1_ref[0:1, :]
    for k in range(1, in_dim):
        h1 = h1 + x_ref[:, k:k + 1] * w1_ref[k:k + 1, :]
    h1 = jnp.maximum(h1, 0.0)

    # ---- Layer 2: Linear(H1 -> H2) + ReLU on the MXU --------------------------
    h2 = jnp.dot(h1, w2_ref[...], preferred_element_type=jnp.float32)
    h2 = jnp.maximum(h2 + b2_ref[...], 0.0)

    # ---- Layer 3: Linear(H2 -> 1) as a lane reduction (XLU) + Sigmoid --------
    # w3 is a (1, H2) row; elementwise mul + cross-lane sum gives a true (TB, 1)
    # output block (no 128-lane padding, ~128x less output HBM traffic).
    logits = jnp.sum(h2 * w3_ref[...], axis=-1, keepdims=True) + b3_ref[0, 0]
    # sigmoid(x) = 1 / (1 + exp(-x)); approx reciprocal runs on the EUP slot.
    o_ref[...] = pl.reciprocal(1.0 + jnp.exp(-logits), approx=True).astype(o_ref.dtype)


def prepare_params(params):
    """One-time (per parameter set) layout prep, hoisted out of the per-call path."""
    w1, b1, w2, b2, w3, b3 = params
    assert w3.shape[1] == 1 and b3.size == 1, "kernel specialised to output_dim=1"
    w3_row = jnp.reshape(jnp.transpose(w3), (1, -1)).astype(jnp.float32)  # (1, H2)
    b3s = jnp.reshape(b3, (1, 1)).astype(jnp.float32)                     # SMEM scalar
    return (w1, b1, w2, b2, w3_row, b3s)


def mlp_forward(x, prepared_params, *, max_block_b=1024):
    """y = sigmoid(relu(relu(x@w1+b1)@w2+b2)@w3+b3), fused in one Pallas kernel."""
    w1, b1, w2, b2, w3_row, b3s = prepared_params
    B, in_dim = x.shape
    H1 = w1.shape[1]
    H2 = w2.shape[1]

    # Generation-aware batch tiling:
    #   single-TC chips (v5e/v6e): one tile, grid=(1,) -> no per-step overhead;
    #   dual-TC v7x: >=2 independent tiles so both TensorCores take work.
    n_tiles = _tiles_per_chip()
    TB = _round_up(pl.cdiv(B, n_tiles), 8)
    TB = min(TB, max_block_b)                  # bound VMEM if B ever gets huge
    Bp = _round_up(B, TB)
    if Bp != B:
        x = jnp.pad(x, ((0, Bp - B), (0, 0)))

    resident = lambda i: (0, 0)                # weights/biases stay VMEM-resident

    out = pl.pallas_call(
        mlp_kernel,
        out_shape=jax.ShapeDtypeStruct((Bp, 1), jnp.float32),
        grid=(Bp // TB,),
        in_specs=[
            pl.BlockSpec((TB, in_dim), lambda i: (i, 0)),        # x tiles stream
            pl.BlockSpec((in_dim, H1), resident),                # w1
            pl.BlockSpec((1, H1), resident),                     # b1
            pl.BlockSpec((H1, H2), resident),                    # w2
            pl.BlockSpec((1, H2), resident),                     # b2
            pl.BlockSpec((1, H2), resident),                     # w3 as a row
            pl.BlockSpec(memory_space=pltpu.MemorySpace.SMEM),   # b3 scalar
        ],
        out_specs=pl.BlockSpec((TB, 1), lambda i: (i, 0)),
        compiler_params=pltpu.CompilerParams(
            # independent batch tiles -> shard across both TCs on v7x
            dimension_semantics=("parallel",),
        ),
    )(x, w1, b1, w2, b2, w3_row, b3s)

    return out[:B] if Bp != B else out


def init_params(key, input_dim=2, hidden_dims=(64, 64), output_dim=1):
    """Deterministic init mimicking PyTorch nn.Linear default (uniform +/- 1/sqrt(fan_in))."""
    dims = [input_dim] + list(hidden_dims) + [output_dim]
    params = []
    for i in range(len(dims) - 1):
        fan_in, fan_out = dims[i], dims[i + 1]
        key, kw, kb = jax.random.split(key, 3)
        bound = 1.0 / np.sqrt(fan_in)
        # stored as (in, out) = transpose of PyTorch's (out, in)
        w = jax.random.uniform(kw, (fan_in, fan_out), jnp.float32, -bound, bound)
        b = jax.random.uniform(kb, (1, fan_out), jnp.float32, -bound, bound)
        params.extend([w, b])
    return params


def reference_forward(x, params):
    w1, b1, w2, b2, w3, b3 = params
    h1 = jnp.maximum(x @ w1 + b1, 0.0)
    h2 = jnp.maximum(h1 @ w2 + b2, 0.0)
    return jax.nn.sigmoid(h2 @ w3 + b3)


# TODO(synk): batch_norm=True branch (nn.BatchNorm1d) not implemented; module default is False.

if __name__ == "__main__":
    key = jax.random.PRNGKey(0)
    key, kx = jax.random.split(key)
    batch, input_dim = 257, 2            # not a multiple of 8 -> exercises batch padding
    x = jax.random.normal(kx, (batch, input_dim), jnp.float32)
    params = init_params(key, input_dim=input_dim, hidden_dims=(64, 64), output_dim=1)

    prepared = prepare_params(params)    # one-time layout prep (hoisted out of the call)
    out = mlp_forward(x, prepared)
    jax.block_until_ready(out)

    ref = reference_forward(x, params)
    # tolerance allows for the approx (EUP) reciprocal in the sigmoid
    np.testing.assert_allclose(np.asarray(out), np.asarray(ref), rtol=2e-3, atol=2e-3)

    print("KERNEL_OK")
</pallas_src>

<mosaic_0001>
module attributes {stable_mosaic.version = 11 : i64} {
  func.func @mlp_kernel(%arg0: i32, %arg1: memref<264x2xf32, #tpu.memory_space<vmem>>, %arg2: memref<2x64xf32, #tpu.memory_space<vmem>>, %arg3: memref<1x64xf32, #tpu.memory_space<vmem>>, %arg4: memref<64x64xf32, #tpu.memory_space<vmem>>, %arg5: memref<1x64xf32, #tpu.memory_space<vmem>>, %arg6: memref<1x64xf32, #tpu.memory_space<vmem>>, %arg7: memref<1x1xf32, #tpu.memory_space<smem>>, %arg8: memref<264x1xf32, #tpu.memory_space<vmem>>) attributes {dimension_semantics = [#tpu.dimension_semantics<parallel>], iteration_bounds = array<i64: 1>, scalar_prefetch = 0 : i64, scratch_operands = 0 : i64, tpu.core_type = #tpu.core_type<tc>, window_params = [{transform_indices = @transform_0, window_bounds = array<i64: 264, 2>}, {pipeline_mode = #tpu.pipeline_mode<synchronous>, transform_indices = @transform_1, window_bounds = array<i64: 2, 64>}, {pipeline_mode = #tpu.pipeline_mode<synchronous>, transform_indices = @transform_2, window_bounds = array<i64: 1, 64>}, {pipeline_mode = #tpu.pipeline_mode<synchronous>, transform_indices = @transform_3, window_bounds = array<i64: 64, 64>}, {pipeline_mode = #tpu.pipeline_mode<synchronous>, transform_indices = @transform_4, window_bounds = array<i64: 1, 64>}, {pipeline_mode = #tpu.pipeline_mode<synchronous>, transform_indices = @transform_5, window_bounds = array<i64: 1, 64>}, {transform_indices = @transform_6, window_bounds = array<i64: 1, 1>}, {transform_indices = @transform_7, window_bounds = array<i64: 264, 1>}]} {
    %c0 = arith.constant 0 : index
    %c0_0 = arith.constant 0 : index
    %0 = vector.load %arg3[%c0, %c0_0] : memref<1x64xf32, #tpu.memory_space<vmem>>, vector<1x64xf32>
    %c0_1 = arith.constant 0 : index
    %c0_2 = arith.constant 0 : index
    %1 = vector.load %arg1[%c0_1, %c0_2] : memref<264x2xf32, #tpu.memory_space<vmem>>, vector<264x1xf32>
    %c0_3 = arith.constant 0 : index
    %c0_4 = arith.constant 0 : index
    %2 = vector.load %arg2[%c0_3, %c0_4] : memref<2x64xf32, #tpu.memory_space<vmem>>, vector<1x64xf32>
    %3 = vector.broadcast %1 : vector<264x1xf32> to vector<264x64xf32>
    %4 = vector.broadcast %2 : vector<1x64xf32> to vector<264x64xf32>
    %5 = arith.mulf %3, %4 : vector<264x64xf32>
    %6 = vector.broadcast %0 : vector<1x64xf32> to vector<264x64xf32>
    %7 = arith.addf %6, %5 : vector<264x64xf32>
    %c0_5 = arith.constant 0 : index
    %c1 = arith.constant 1 : index
    %8 = vector.load %arg1[%c0_5, %c1] : memref<264x2xf32, #tpu.memory_space<vmem>>, vector<264x1xf32>
    %c1_6 = arith.constant 1 : index
    %c0_7 = arith.constant 0 : index
    %9 = vector.load %arg2[%c1_6, %c0_7] : memref<2x64xf32, #tpu.memory_space<vmem>>, vector<1x64xf32>
    %10 = vector.broadcast %8 : vector<264x1xf32> to vector<264x64xf32>
    %11 = vector.broadcast %9 : vector<1x64xf32> to vector<264x64xf32>
    %12 = arith.mulf %10, %11 : vector<264x64xf32>
    %13 = arith.addf %7, %12 : vector<264x64xf32>
    %cst = arith.constant 0.000000e+00 : f32
    %14 = vector.broadcast %cst : f32 to vector<264x64xf32>
    %15 = arith.maximumf %13, %14 : vector<264x64xf32>
    %c0_8 = arith.constant 0 : index
    %c0_9 = arith.constant 0 : index
    %16 = vector.load %arg4[%c0_8, %c0_9] : memref<64x64xf32, #tpu.memory_space<vmem>>, vector<64x64xf32>
    %cst_10 = arith.constant dense<0.000000e+00> : vector<264x64xf32>
    %17 = tpu.matmul %15, %16, %cst_10 {dimension_numbers = #tpu.dot_dimension_numbers<[1], [0], [0], [1], [0, 0, 1, 1], [], []>} : vector<264x64xf32>, vector<64x64xf32>, vector<264x64xf32> -> vector<264x64xf32>
    %c0_11 = arith.constant 0 : index
    %c0_12 = arith.constant 0 : index
    %18 = vector.load %arg5[%c0_11, %c0_12] : memref<1x64xf32, #tpu.memory_space<vmem>>, vector<1x64xf32>
    %19 = vector.broadcast %18 : vector<1x64xf32> to vector<264x64xf32>
    %20 = arith.addf %17, %19 : vector<264x64xf32>
    %cst_13 = arith.constant 0.000000e+00 : f32
    %21 = vector.broadcast %cst_13 : f32 to vector<264x64xf32>
    %22 = arith.maximumf %20, %21 : vector<264x64xf32>
    %c0_14 = arith.constant 0 : index
    %c0_15 = arith.constant 0 : index
    %23 = vector.load %arg6[%c0_14, %c0_15] : memref<1x64xf32, #tpu.memory_space<vmem>>, vector<1x64xf32>
    %24 = vector.broadcast %23 : vector<1x64xf32> to vector<264x64xf32>
    %25 = arith.mulf %22, %24 : vector<264x64xf32>
    %cst_16 = arith.constant dense<0.000000e+00> : vector<264xf32>
    %26 = vector.multi_reduction <add>, %25, %cst_16 [1] : vector<264x64xf32> to vector<264xf32>
    %27 = vector.shape_cast %26 : vector<264xf32> to vector<264x1xf32>
    %c0_17 = arith.constant 0 : index
    %c0_18 = arith.constant 0 : index
    %28 = memref.load %arg7[%c0_17, %c0_18] : memref<1x1xf32, #tpu.memory_space<smem>>
    %29 = vector.broadcast %28 : f32 to vector<264x1xf32>
    %30 = arith.addf %27, %29 : vector<264x1xf32>
    %cst_19 = arith.constant 0.000000e+00 : f32
    %31 = vector.broadcast %cst_19 : f32 to vector<264x1xf32>
    %32 = arith.subf %31, %30 : vector<264x1xf32>
    %33 = math.exp %32 : vector<264x1xf32>
    %cst_20 = arith.constant 1.000000e+00 : f32
    %34 = vector.broadcast %cst_20 : f32 to vector<264x1xf32>
    %35 = arith.addf %34, %33 : vector<264x1xf32>
    %36 = tpu.reciprocal %35 {approx = true} : vector<264x1xf32> -> vector<264x1xf32>
    %c0_21 = arith.constant 0 : index
    %c0_22 = arith.constant 0 : index
    %37 = vector.load %arg8[%c0_21, %c0_22] : memref<264x1xf32, #tpu.memory_space<vmem>>, vector<264x1xf32>
    tpu.vector_store %arg8[%c0_21, %c0_22], %36 {strides = array<i32>} : memref<264x1xf32, #tpu.memory_space<vmem>>, vector<264x1xf32>,
    return
  }
  func.func @transform_0(%arg0: i32) -> (i32, i32) {
    %c0_i32 = arith.constant 0 : i32
    %c0_i32_0 = arith.constant 0 : i32
    return %arg0, %c0_i32 : i32, i32
  }
  func.func @transform_1(%arg0: i32) -> (i32, i32) {
    %c0_i32 = arith.constant 0 : i32
    %c0_i32_0 = arith.constant 0 : i32
    %c0_i32_1 = arith.constant 0 : i32
    return %c0_i32, %c0_i32_0 : i32, i32
  }
  func.func @transform_2(%arg0: i32) -> (i32, i32) {
    %c0_i32 = arith.constant 0 : i32
    %c0_i32_0 = arith.constant 0 : i32
    %c0_i32_1 = arith.constant 0 : i32
    return %c0_i32, %c0_i32_0 : i32, i32
  }
  func.func @transform_3(%arg0: i32) -> (i32, i32) {
    %c0_i32 = arith.constant 0 : i32
    %c0_i32_0 = arith.constant 0 : i32
    %c0_i32_1 = arith.constant 0 : i32
    return %c0_i32, %c0_i32_0 : i32, i32
  }
  func.func @transform_4(%arg0: i32) -> (i32, i32) {
    %c0_i32 = arith.constant 0 : i32
    %c0_i32_0 = arith.constant 0 : i32
    %c0_i32_1 = arith.constant 0 : i32
    return %c0_i32, %c0_i32_0 : i32, i32
  }
  func.func @transform_5(%arg0: i32) -> (i32, i32) {
    %c0_i32 = arith.constant 0 : i32
    %c0_i32_0 = arith.constant 0 : i32
    %c0_i32_1 = arith.constant 0 : i32
    return %c0_i32, %c0_i32_0 : i32, i32
  }
  func.func @transform_6(%arg0: i32) -> (i32, i32) {
    %c0_i32 = arith.constant 0 : i32
    %c0_i32_0 = arith.constant 0 : i32
    %c0_i32_1 = arith.constant 0 : i32
    return %c0_i32, %c0_i32_0 : i32, i32
  }
  func.func @transform_7(%arg0: i32) -> (i32, i32) {
    %c0_i32 = arith.constant 0 : i32
    %c0_i32_0 = arith.constant 0 : i32
    return %arg0, %c0_i32 : i32, i32
  }
}

</mosaic_0001>

<bundles_post_ra>
// kernel: tpu_custom_call.1
= control target key start
LH: loop header
LB: loop body
LE: loop exit
PB: predicated region body
PF: predicated region fallthrough
CT: control target
= control target key end

     0   :  { %v1681_v0 = vmov 0   ;;  %v1682_v4 = vmov 0.0|0.0   ;;  %v1683_v5 = vmov 1   ;;  %vm1684_vm0 = vmmov 0   ;;  %s2407_s0 = inlined_call_operand.vmem [shape: f32[264,2], index: 0, kind: input, shape index: {}]   ;;  %s2408_s3 = inlined_call_operand.vmem [shape: f32[64,64], index: 3, kind: input, shape index: {}]   ;;  %s2409_s1 = inlined_call_operand.vmem [shape: f32[2,64], index: 1, kind: input, shape index: {}]   ;;  %s2410_s2 = inlined_call_operand.vmem [shape: f32[1,64], index: 2, kind: input, shape index: {}]   ;;  %s2411_s4 = inlined_call_operand.vmem [shape: f32[1,64], index: 4, kind: input, shape index: {}]   ;;  %s2412_s5 = inlined_call_operand.vmem [shape: f32[1,64], index: 5, kind: input, shape index: {}]   ;;  %s2413_s6 = inlined_call_operand.<no memory space> [shape: f32[1,1], index: 6, kind: input, shape index: {}]   ;;  %s2414_s7 = inlined_call_operand.vmem [shape: f32[264,1], index: 7, kind: output, shape index: {}]  }
   0x1   :  { %1515 = vset.pattern.permute.xlu1 %v1681_v0  ;;  %1513 = vset.pattern.permute.xlu0 %v1681_v0  ;;  %v29_v1 = vld [vmem:[%s2407_s0 + $0x8] sm:$0xff]  ;;  %v28_v2 = vld [vmem:[%s2407_s0] sm:$0xff]  ;;  %v541_v9 = vld [vmem:[%s2408_s3 + $0x10] sm:$0xff]  ;;  %v1685_v12 = vmov 0.0   ;;  %vm554_vm1 = vcmask 523264   ;;  %vm1256_vm2 = vcmask 7168  }
   0x2   :  { %69 = vperm.xlu1 %1515, %v29_v1   ;;  %64 = vperm.xlu0 %1513, %v28_v2   ;;  %v45_v3 = vld [vmem:[%s2407_s0 + $0x88] sm:$0xff]  ;;  %v539_v6 = vld [vmem:[%s2408_s3] sm:$0xff]  ;;  %v542_v10 = vld [vmem:[%s2408_s3 + $0x18] sm:$0xff] }
   0x3   :  { %1488 = vmatprep.subr.bf16.mxu0 %v1682_v4  ;;  %1500 = vmatprep.subr.bf16.mxu1 %v1682_v4  ;;  %v540_v7 = vld [vmem:[%s2408_s3 + $0x8] sm:$0xff]  ;;  %v31_v11 = vld [vmem:[%s2407_s0 + $0x18] sm:$0xff]  ;;  %v30_v13 = vld [vmem:[%s2407_s0 + $0x10] sm:$0xff]  ;;  %v1492_v14 = vpack.c.bf16 %v542_v10, %v541_v9 }
   0x4   :  { %v1489_v8 = vpack.c.bf16 %v540_v7, %v539_v6  ;;  %1389 = vmatprep.mubr.msk.f32.mxu0 %vm1684_vm0, %v1685_v12  ;;  %1440 = vmatprep.mubr.msk.f32.mxu1 %vm1684_vm0, %v1685_v12  ;;  %v543_v15 = vld [vmem:[%s2408_s3 + $0x20] sm:$0xff]  ;;  %v544_v16 = vld [vmem:[%s2408_s3 + $0x28] sm:$0xff]  ;;  %v545_v19 = vld [vmem:[%s2408_s3 + $0x30] sm:$0xff] }
   0x5   :  { %v33_v17 = vld [vmem:[%s2407_s0 + $0x28] sm:$0xff]  ;;  %v1495_v18 = vpack.c.bf16 %v544_v16, %v543_v15  ;;  %v546_v20 = vld [vmem:[%s2408_s3 + $0x38] sm:$0xff]  ;;  %v46_v23 = vld [vmem:[%s2407_s0 + $0x90] sm:$0xff] }
   0x6   :  { %149 = vperm.xlu1 %1515, %v45_v3   ;;  %1514 = vset.pattern.permute.xlu0 %v1683_v5  ;;  %v35_v21 = vld [vmem:[%s2407_s0 + $0x38] sm:$0xff]  ;;  %v1498_v22 = vpack.c.bf16 %v546_v20, %v545_v19  ;;  %v37_v24 = vld [vmem:[%s2407_s0 + $0x48] sm:$0xff]  ;;  %v32_v29 = vld [vmem:[%s2407_s0 + $0x20] sm:$0xff] }
   0x7   :  { %305 = vperm.xlu0 %1514, %v28_v2   ;;  %1490 = vmatpush3.bf16.msra.mxu0 %v1489_v8  ;;  %v47_v25 = vld [vmem:[%s2407_s0 + $0x98] sm:$0xff]  ;;  %v41_v27 = vld [vmem:[%s2407_s0 + $0x68] sm:$0xff]  ;;  %v48_v30 = vld [vmem:[%s2407_s0 + $0xa0] sm:$0xff] }
   0x8   :  { %1504 = vmatpush3.bf16.msra.mxu1 %v1489_v8  ;;  %1491 = vmatprep.subr.bf16.mxu0 %v1682_v4  ;;  %v39_v26 = vld [vmem:[%s2407_s0 + $0x58] sm:$0xff]  ;;  %v49_v31 = vld [vmem:[%s2407_s0 + $0xa8] sm:$0xff]  ;;  %v50_v32 = vld [vmem:[%s2407_s0 + $0xb0] sm:$0xff] }
   0x9   :  { %1501 = vmatprep.subr.bf16.mxu1 %v1682_v4  ;;  %v43_v28 = vld [vmem:[%s2407_s0 + $0x78] sm:$0xff]  ;;  %v34_v33 = vld [vmem:[%s2407_s0 + $0x30] sm:$0xff]  ;;  %v52_v34 = vld [vmem:[%s2407_s0 + $0xc0] sm:$0xff] }
   0xa   :  { %1516 = vset.pattern.permute.xlu1 %v1683_v5  ;;  %v54_v35 = vld [vmem:[%s2407_s0 + $0xd0] sm:$0xff]  ;;  %v51_v36 = vld [vmem:[%s2407_s0 + $0xb8] sm:$0xff]  ;;  %v1836_v37 = vld [vmem:[%s2407_s0 + $0xe0] sm:$0xff] }
   0xb   :  { %309 = vperm.xlu1 %1516, %v29_v1   ;;  %373 = vperm.xlu0 %1514, %v45_v3   ;;  %v36_v38 = vld [vmem:[%s2407_s0 + $0x40] sm:$0xff]  ;;  %v1847_v39 = vld [vmem:[%s2407_s0 + $0xf0] sm:$0xff]  ;;  %v53_v41 = vld [vmem:[%s2407_s0 + $0xc8] sm:$0xff] }
   0xc   :  { %1493 = vmatpush3.bf16.msra.mxu0 %v1492_v14  ;;  %1505 = vmatpush3.bf16.msra.mxu1 %v1492_v14  ;;  %v1854_v40 = vld [vmem:[%s2407_s0 + $0x100] sm:$0xff]  ;;  %v38_v42 = vld [vmem:[%s2407_s0 + $0x50] sm:$0xff]  ;;  %v55_v43 = vld [vmem:[%s2407_s0 + $0xd8] sm:$0xff] }
   0xd   :  { %1494 = vmatprep.subr.bf16.mxu0 %v1682_v4  ;;  %1502 = vmatprep.subr.bf16.mxu1 %v1682_v4  ;;  %v1875_v44 = vld [vmem:[%s2409_s1] ss:$0 sm:$0xff]  ;;  %v1887_v49 = vld [vmem:[%s2409_s1 + $0x1] ss:$0 sm:$0xff] }
   0xe   :  { %v1882_v48 = vld [vmem:[%s2410_s2] ss:$0 sm:$0xff] }
   0xf   :  { %1517 = vset.pattern.permute.xlu1 %v1681_v0  ;;  %317 = vperm.xlu0 %1514, %v31_v11   ;;  %v40_v52 = vld [vmem:[%s2407_s0 + $0x60] sm:$0xff] }
  0x10   :  { %74 = vperm.xlu1 %1517, %v30_v13   ;;  %1496 = vmatpush3.bf16.msra.mxu0 %v1495_v18 }
  0x11   :  { %1497 = vmatprep.subr.bf16.mxu0 %v1682_v4  ;;  %1506 = vmatpush3.bf16.msra.mxu1 %v1495_v18 }
  0x12   :  { %1503 = vmatprep.subr.bf16.mxu1 %v1682_v4 }
  0x13   :  { %325 = vperm.xlu0 %1514, %v33_v17  }
  0x14   :  { %1518 = vset.pattern.permute.xlu1 %v1683_v5  ;;  %1499 = vmatpush3.bf16.msra.mxu0 %v1498_v22 }
  0x15   :  { %313 = vperm.xlu1 %1518, %v30_v13   ;;  %1507 = vmatpush3.bf16.msra.mxu1 %v1498_v22  ;;  %v42_v22 = vld [vmem:[%s2407_s0 + $0x70] sm:$0xff] }
  0x17   :  { %333 = vperm.xlu0 %1514, %v35_v21  }
  0x19   :  { %377 = vperm.xlu1 %1518, %v46_v23  }
  0x1b   :  { %341 = vperm.xlu0 %1514, %v37_v24  }
  0x1d   :  { %1519 = vset.pattern.permute.xlu1 %v1681_v0 }
  0x1e   :  { %159 = vperm.xlu1 %1519, %v47_v25  }
  0x1f   :  { %349 = vperm.xlu0 %1514, %v39_v26  }
  0x22   :  { %1520 = vset.pattern.permute.xlu1 %v1683_v5 }
  0x23   :  { %381 = vperm.xlu1 %1520, %v47_v25   ;;  %357 = vperm.xlu0 %1514, %v41_v27  }
  0x27   :  { %1521 = vset.pattern.permute.xlu1 %v1681_v0  ;;  %365 = vperm.xlu0 %1514, %v43_v28  }
  0x28   :  { %84 = vperm.xlu1 %1521, %v32_v29  }
  0x2b   :  { %1544 = vset.pattern.permute.xlu0 %v1681_v0 }
  0x2c   :  { %1522 = vset.pattern.permute.xlu1 %v1683_v5  ;;  %154 = vperm.xlu0 %1544, %v46_v23  }
  0x2d   :  { %321 = vperm.xlu1 %1522, %v32_v29   ;;  %v59_v29 = vld [vmem:[%s2407_s0 + $0xf8] sm:$0xff] }
  0x30   :  { %79 = vperm.xlu0 %1544, %v31_v11   ;;  %v57_v11 = vld [vmem:[%s2407_s0 + $0xe8] sm:$0xff] }
  0x31   :  { %385 = vperm.xlu1 %1522, %v48_v30  }
  0x34   :  { %164 = vperm.xlu0 %1544, %v48_v30  }
  0x35   :  { %1523 = vset.pattern.permute.xlu1 %v1681_v0 }
  0x36   :  { %169 = vperm.xlu1 %1523, %v49_v31  }
  0x38   :  { %89 = vperm.xlu0 %1544, %v33_v17  }
  0x3a   :  { %1524 = vset.pattern.permute.xlu1 %v1683_v5 }
  0x3b   :  { %389 = vperm.xlu1 %1524, %v49_v31  }
  0x3c   :  { %174 = vperm.xlu0 %1544, %v50_v32  }
  0x3f   :  { %1525 = vset.pattern.permute.xlu1 %v1681_v0 }
  0x40   :  { %94 = vperm.xlu1 %1525, %v34_v33   ;;  %99 = vperm.xlu0 %1544, %v35_v21  }
  0x44   :  { %1526 = vset.pattern.permute.xlu1 %v1683_v5  ;;  %184 = vperm.xlu0 %1544, %v52_v34  }
  0x45   :  { %329 = vperm.xlu1 %1526, %v34_v33  }
  0x48   :  { %109 = vperm.xlu0 %1544, %v37_v24  }
  0x49   :  { %393 = vperm.xlu1 %1526, %v50_v32  }
  0x4c   :  { %194 = vperm.xlu0 %1544, %v54_v35  }
  0x4d   :  { %1527 = vset.pattern.permute.xlu1 %v1681_v0 }
  0x4e   :  { %179 = vperm.xlu1 %1527, %v51_v36  }
  0x50   :  { %119 = vperm.xlu0 %1544, %v39_v26  }
  0x52   :  { %1528 = vset.pattern.permute.xlu1 %v1683_v5 }
  0x53   :  { %397 = vperm.xlu1 %1528, %v51_v36  }
  0x54   :  { %204 = vperm.xlu0 %1544, %v1836_v37  }
  0x57   :  { %1529 = vset.pattern.permute.xlu1 %v1681_v0 }
  0x58   :  { %104 = vperm.xlu1 %1529, %v36_v38   ;;  %129 = vperm.xlu0 %1544, %v41_v27  }
  0x5c   :  { %1530 = vset.pattern.permute.xlu1 %v1683_v5  ;;  %214 = vperm.xlu0 %1544, %v1847_v39  }
  0x5d   :  { %337 = vperm.xlu1 %1530, %v36_v38  }
  0x60   :  { %139 = vperm.xlu0 %1544, %v43_v28  }
  0x61   :  { %401 = vperm.xlu1 %1530, %v52_v34  }
  0x64   :  { %224 = vperm.xlu0 %1544, %v1854_v40  }
  0x65   :  { %1531 = vset.pattern.permute.xlu1 %v1681_v0 }
  0x66   :  { %189 = vperm.xlu1 %1531, %v53_v41  }
  0x68   :  { %1548 = vset.pattern.permute.xlu0 %v1683_v5 }
  0x6a   :  { %1532 = vset.pattern.permute.xlu1 %v1683_v5 }
  0x6b   :  { %405 = vperm.xlu1 %1532, %v53_v41  }
  0x6f   :  { %1533 = vset.pattern.permute.xlu1 %v1681_v0 }
  0x70   :  { %114 = vperm.xlu1 %1533, %v38_v42  }
  0x74   :  { %1534 = vset.pattern.permute.xlu1 %v1683_v5 }
  0x75   :  { %345 = vperm.xlu1 %1534, %v38_v42  }
  0x79   :  { %409 = vperm.xlu1 %1534, %v54_v35  }
  0x7d   :  { %1535 = vset.pattern.permute.xlu1 %v1681_v0 }
  0x7e   :  { %199 = vperm.xlu1 %1535, %v55_v43  }
  0x81   :  { %v70_v45 = vpop.permute.xlu1 %69  ;;  %v65_v46 = vpop.permute.xlu0 %64 }
  0x82   :  { %1536 = vset.pattern.permute.xlu1 %v1683_v5  ;;  %v231_v47 = vmul.f32 %v1875_v44, %v65_v46  ;;  %v232_v53 = vmul.f32 %v1875_v44, %v70_v45 }
  0x83   :  { %413 = vperm.xlu1 %1536, %v55_v43  }
  0x84   :  { %v270_v50 = vadd.f32 %v1882_v48, %v231_v47  ;;  %v271_v58 = vadd.f32 %v1882_v48, %v232_v53 }
  0x85   :  { %v150_v51 = vpop.permute.xlu1 %149 }
  0x86   :  { %v306_v54 = vpop.permute.xlu0 %305  ;;  %v248_v55 = vmul.f32 %v1875_v44, %v150_v51 }
  0x87   :  { %v440_v56 = vmul.f32 %v1887_v49, %v306_v54  ;;  %1537 = vset.pattern.permute.xlu1 %v1681_v0 }
  0x88   :  { %124 = vperm.xlu1 %1537, %v40_v52   ;;  %v287_v61 = vadd.f32 %v1882_v48, %v248_v55 }
  0x89   :  { %v473_v57 = vadd.f32 %v440_v56, %v270_v50  ;;  %v44_v56 = vld [vmem:[%s2407_s0 + $0x80] sm:$0xff] }
  0x8a   :  { %v310_v59 = vpop.permute.xlu1 %309  ;;  %v374_v60 = vpop.permute.xlu0 %373 }
  0x8b   :  { %v506_v62 = vmax.f32 %v473_v57, 0.0  ;;  %v441_v63 = vmul.f32 %v1887_v49, %v310_v59  ;;  %v457_v1 = vmul.f32 %v1887_v49, %v374_v60 }
  0x8c   :  { %1538 = vset.pattern.permute.xlu1 %v1683_v5 }
  0x8d   :  { %v474_v2 = vadd.f32 %v441_v63, %v271_v58  ;;  %v490_v3 = vadd.f32 %v457_v1, %v287_v61  ;;  %353 = vperm.xlu1 %1538, %v40_v52   ;;  %1390 = vmatmul.mubr.msk.f32.vlgmr.msra.gmra.mrb[0].mxu0 %vm554_vm1, %v506_v62 }
  0x8e   :  { %v318_v4 = vpop.permute.xlu0 %317  ;;  %1392 = vmatprep.mubr.msk.f32.mxu0 %vm1684_vm0, %v1685_v12 }
  0x8f   :  { %v507_v6 = vmax.f32 %v474_v2, 0.0  ;;  %v523_v7 = vmax.f32 %v490_v3, 0.0  ;;  %v75_v8 = vpop.permute.xlu1 %74 }
  0x90   :  { %v233_v9 = vmul.f32 %v1875_v44, %v75_v8 }
  0x91   :  { %417 = vperm.xlu1 %1538, %v1836_v37   ;;  %1393 = vmatmul.mubr.msk.f32.gmra.mrb[2].mxu0 %vm554_vm1, %v507_v6  ;;  %v443_v37 = vmul.f32 %v1887_v49, %v318_v4 }
  0x92   :  { %1441 = vmatmul.mubr.msk.f32.vlgmr.msra.gmra.mrb[0].mxu1 %vm554_vm1, %v523_v7  ;;  %v1909_v10 = vpop.permute.xlu0 %325  ;;  %1395 = vmatprep.mubr.msk.f32.mxu0 %vm1684_vm0, %v1685_v12  ;;  %v272_v14 = vadd.f32 %v1882_v48, %v233_v9 }
  0x93   :  { %1443 = vmatprep.mubr.msk.f32.mxu1 %vm1684_vm0, %v1685_v12  ;;  %v445_v1 = vmul.f32 %v1887_v49, %v1909_v10 }
  0x94   :  { %v314_v13 = vpop.permute.xlu1 %313 }
  0x95   :  { %v442_v15 = vmul.f32 %v1887_v49, %v314_v13  ;;  %1539 = vset.pattern.permute.xlu1 %v1681_v0 }
  0x96   :  { %209 = vperm.xlu1 %1539, %v57_v11   ;;  %v1921_v16 = vpop.permute.xlu0 %333 }
  0x97   :  { %v475_v17 = vadd.f32 %v442_v15, %v272_v14 }
  0x98   :  { %v378_v18 = vpop.permute.xlu1 %377 }
  0x99   :  { %v508_v19 = vmax.f32 %v475_v17, 0.0  ;;  %v458_v33 = vmul.f32 %v1887_v49, %v378_v18 }
  0x9a   :  { %1540 = vset.pattern.permute.xlu1 %v1683_v5  ;;  %v1924_v20 = vpop.permute.xlu0 %341 }
  0x9b   :  { %421 = vperm.xlu1 %1540, %v57_v11   ;;  %1396 = vmatmul.mubr.msk.f32.gmra.mrb[4].mxu0 %vm554_vm1, %v508_v19 }
  0x9c   :  { %1398 = vmatprep.mubr.msk.f32.mxu0 %vm1684_vm0, %v1685_v12 }
  0x9d   :  { %v160_v21 = vpop.permute.xlu1 %159 }
  0x9e   :  { %v1932_v23 = vpop.permute.xlu0 %349  ;;  %v250_v32 = vmul.f32 %v1875_v44, %v160_v21  ;;  %v447_v21 = vmul.f32 %v1887_v49, %v1921_v16 }
  0x9f   :  { %1541 = vset.pattern.permute.xlu1 %v1681_v0 }
  0xa0   :  { %134 = vperm.xlu1 %1541, %v42_v22   ;;  %v289_v43 = vadd.f32 %v1882_v48, %v250_v32 }
  0xa2   :  { %v382_v24 = vpop.permute.xlu1 %381  ;;  %v1935_v25 = vpop.permute.xlu0 %357 }
  0xa3   :  { %v459_v35 = vmul.f32 %v1887_v49, %v382_v24 }
  0xa4   :  { %1542 = vset.pattern.permute.xlu1 %v1683_v5 }
  0xa5   :  { %361 = vperm.xlu1 %1542, %v42_v22   ;;  %v492_v50 = vadd.f32 %v459_v35, %v289_v43 }
  0xa6   :  { %v1938_v26 = vpop.permute.xlu0 %365 }
  0xa7   :  { %v85_v27 = vpop.permute.xlu1 %84  ;;  %v525_v61 = vmax.f32 %v492_v50, 0.0 }
  0xa8   :  { %v235_v38 = vmul.f32 %v1875_v44, %v85_v27 }
  0xa9   :  { %425 = vperm.xlu1 %1542, %v1847_v39  }
  0xaa   :  { %v274_v52 = vadd.f32 %v1882_v48, %v235_v38 }
  0xab   :  { %v155_v28 = vpop.permute.xlu0 %154 }
  0xac   :  { %v249_v30 = vmul.f32 %v1875_v44, %v155_v28  ;;  %v322_v31 = vpop.permute.xlu1 %321 }
  0xad   :  { %1543 = vset.pattern.permute.xlu1 %v1681_v0  ;;  %v444_v46 = vmul.f32 %v1887_v49, %v322_v31 }
  0xae   :  { %v288_v34 = vadd.f32 %v1882_v48, %v249_v30  ;;  %219 = vperm.xlu1 %1543, %v59_v29  }
  0xaf   :  { %v80_v36 = vpop.permute.xlu0 %79  ;;  %v477_v57 = vadd.f32 %v444_v46, %v274_v52 }
  0xb0   :  { %v491_v39 = vadd.f32 %v458_v33, %v288_v34  ;;  %v234_v41 = vmul.f32 %v1875_v44, %v80_v36  ;;  %v386_v42 = vpop.permute.xlu1 %385 }
  0xb1   :  { %v460_v59 = vmul.f32 %v1887_v49, %v386_v42  ;;  %v510_v4 = vmax.f32 %v477_v57, 0.0 }
  0xb2   :  { %v524_v45 = vmax.f32 %v491_v39, 0.0  ;;  %v273_v47 = vadd.f32 %v1882_v48, %v234_v41  ;;  %1545 = vset.pattern.permute.xlu1 %v1683_v5 }
  0xb3   :  { %429 = vperm.xlu1 %1545, %v59_v29   ;;  %v165_v51 = vpop.permute.xlu0 %164 }
  0xb4   :  { %v476_v53 = vadd.f32 %v443_v37, %v273_v47  ;;  %v251_v54 = vmul.f32 %v1875_v44, %v165_v51  ;;  %1444 = vmatmul.mubr.msk.f32.gmra.mrb[2].mxu1 %vm554_vm1, %v524_v45 }
  0xb5   :  { %v170_v55 = vpop.permute.xlu1 %169  ;;  %1446 = vmatprep.mubr.msk.f32.mxu1 %vm1684_vm0, %v1685_v12 }
  0xb6   :  { %v509_v58 = vmax.f32 %v476_v53, 0.0  ;;  %v290_v60 = vadd.f32 %v1882_v48, %v251_v54  ;;  %v252_v62 = vmul.f32 %v1875_v44, %v170_v55  ;;  %v449_v55 = vmul.f32 %v1887_v49, %v1924_v20 }
  0xb7   :  { %1546 = vset.pattern.permute.xlu1 %v1681_v0  ;;  %v90_v63 = vpop.permute.xlu0 %89 }
  0xb8   :  { %v493_v2 = vadd.f32 %v460_v59, %v290_v60  ;;  %v236_v3 = vmul.f32 %v1875_v44, %v90_v63  ;;  %144 = vperm.xlu1 %1546, %v44_v56   ;;  %1399 = vmatmul.mubr.msk.f32.gmra.mrb[6].mxu0 %vm554_vm1, %v509_v58  ;;  %v291_v8 = vadd.f32 %v1882_v48, %v252_v62 }
  0xb9   :  { %1447 = vmatmul.mubr.msk.f32.gmra.mrb[4].mxu1 %vm554_vm1, %v525_v61  ;;  %1401 = vmatprep.mubr.msk.f32.mxu0 %vm1684_vm0, %v1685_v12 }
  0xba   :  { %v526_v6 = vmax.f32 %v493_v2, 0.0  ;;  %v275_v7 = vadd.f32 %v1882_v48, %v236_v3  ;;  %v390_v0 = vpop.permute.xlu1 %389  ;;  %1449 = vmatprep.mubr.msk.f32.mxu1 %vm1684_vm0, %v1685_v12 }
  0xbb   :  { %v461_v9 = vmul.f32 %v1887_v49, %v390_v0  ;;  %v175_v10 = vpop.permute.xlu0 %174 }
  0xbc   :  { %v478_v11 = vadd.f32 %v445_v1, %v275_v7  ;;  %1547 = vset.pattern.permute.xlu1 %v1683_v5  ;;  %1402 = vmatmul.mubr.msk.f32.gmra.mrb[8].mxu0 %vm554_vm1, %v510_v4  ;;  %v253_v22 = vmul.f32 %v1875_v44, %v175_v10 }
  0xbd   :  { %v494_v13 = vadd.f32 %v461_v9, %v291_v8  ;;  %1450 = vmatmul.mubr.msk.f32.gmra.mrb[6].mxu1 %vm554_vm1, %v526_v6  ;;  %369 = vperm.xlu1 %1547, %v44_v56  }
  0xbe   :  { %v511_v14 = vmax.f32 %v478_v11, 0.0  ;;  %1452 = vmatprep.mubr.msk.f32.mxu1 %vm1684_vm0, %v1685_v12  ;;  %1404 = vmatprep.mubr.msk.f32.mxu0 %vm1684_vm0, %v1685_v12  ;;  %v292_v29 = vadd.f32 %v1882_v48, %v253_v22 }
  0xbf   :  { %v527_v15 = vmax.f32 %v494_v13, 0.0  ;;  %v95_v17 = vpop.permute.xlu1 %94  ;;  %v100_v18 = vpop.permute.xlu0 %99 }
  0xc0   :  { %v238_v19 = vmul.f32 %v1875_v44, %v100_v18  ;;  %1405 = vmatmul.mubr.msk.f32.gmra.mrb[10].mxu0 %vm554_vm1, %v511_v14  ;;  %v237_v5 = vmul.f32 %v1875_v44, %v95_v17 }
  0xc1   :  { %433 = vperm.xlu1 %1547, %v1854_v40   ;;  %1453 = vmatmul.mubr.msk.f32.gmra.mrb[8].mxu1 %vm554_vm1, %v527_v15 }
  0xc2   :  { %1407 = vmatprep.mubr.msk.f32.mxu0 %vm1684_vm0, %v1685_v12  ;;  %1455 = vmatprep.mubr.msk.f32.mxu1 %vm1684_vm0, %v1685_v12  ;;  %v277_v24 = vadd.f32 %v1882_v48, %v238_v19  ;;  %v276_v28 = vadd.f32 %v1882_v48, %v237_v5  ;;  %v451_v5 = vmul.f32 %v1887_v49, %v1932_v23 }
  0xc3   :  { %v185_v39 = vpop.permute.xlu0 %184 }
  0xc4   :  { %v330_v27 = vpop.permute.xlu1 %329  ;;  %v480_v30 = vadd.f32 %v447_v21, %v277_v24  ;;  %v255_v53 = vmul.f32 %v1875_v44, %v185_v39 }
  0xc5   :  { %v446_v40 = vmul.f32 %v1887_v49, %v330_v27 }
  0xc6   :  { %v513_v35 = vmax.f32 %v480_v30, 0.0  ;;  %v294_v59 = vadd.f32 %v1882_v48, %v255_v53 }
  0xc7   :  { %v479_v31 = vadd.f32 %v446_v40, %v276_v28  ;;  %v110_v50 = vpop.permute.xlu0 %109 }
  0xc8   :  { %v394_v32 = vpop.permute.xlu1 %393  ;;  %v240_v51 = vmul.f32 %v1875_v44, %v110_v50 }
  0xc9   :  { %v512_v33 = vmax.f32 %v479_v31, 0.0  ;;  %v462_v34 = vmul.f32 %v1887_v49, %v394_v32 }
  0xca   :  { %v279_v56 = vadd.f32 %v1882_v48, %v240_v51 }
  0xcb   :  { %v495_v36 = vadd.f32 %v462_v34, %v292_v29  ;;  %1408 = vmatmul.mubr.msk.f32.gmra.mrb[12].mxu0 %vm554_vm1, %v512_v33  ;;  %v195_v7 = vpop.permute.xlu0 %194 }
  0xcc   :  { %1410 = vmatprep.mubr.msk.f32.mxu0 %vm1684_vm0, %v1685_v12  ;;  %v482_v62 = vadd.f32 %v449_v55, %v279_v56  ;;  %v257_v18 = vmul.f32 %v1875_v44, %v195_v7 }
  0xcd   :  { %v528_v16 = vmax.f32 %v495_v36, 0.0  ;;  %v180_v37 = vpop.permute.xlu1 %179 }
  0xce   :  { %v254_v38 = vmul.f32 %v1875_v44, %v180_v37  ;;  %v515_v20 = vmax.f32 %v482_v62, 0.0  ;;  %v296_v27 = vadd.f32 %v1882_v48, %v257_v18  ;;  %v455_v18 = vmul.f32 %v1887_v49, %v1938_v26 }
  0xcf   :  { %1456 = vmatmul.mubr.msk.f32.gmra.mrb[10].mxu1 %vm554_vm1, %v528_v16  ;;  %1411 = vmatmul.mubr.msk.f32.gmra.mrb[14].mxu0 %vm554_vm1, %v513_v35  ;;  %v120_v14 = vpop.permute.xlu0 %119 }
  0xd0   :  { %1458 = vmatprep.mubr.msk.f32.mxu1 %vm1684_vm0, %v1685_v12  ;;  %1413 = vmatprep.mubr.msk.f32.mxu0 %vm1684_vm0, %v1685_v12  ;;  %v293_v42 = vadd.f32 %v1882_v48, %v254_v38  ;;  %v242_v15 = vmul.f32 %v1875_v44, %v120_v14 }
  0xd2   :  { %v398_v41 = vpop.permute.xlu1 %397  ;;  %v281_v21 = vadd.f32 %v1882_v48, %v242_v15 }
  0xd3   :  { %v463_v43 = vmul.f32 %v1887_v49, %v398_v41  ;;  %v205_v36 = vpop.permute.xlu0 %204 }
  0xd4   :  { %v484_v29 = vadd.f32 %v451_v5, %v281_v21  ;;  %v259_v51 = vmul.f32 %v1875_v44, %v205_v36 }
  0xd5   :  { %v496_v45 = vadd.f32 %v463_v43, %v293_v42 }
  0xd6   :  { %v517_v23 = vmax.f32 %v484_v29, 0.0 }
  0xd7   :  { %v529_v46 = vmax.f32 %v496_v45, 0.0  ;;  %v105_v47 = vpop.permute.xlu1 %104  ;;  %v130_v43 = vpop.permute.xlu0 %129 }
  0xd8   :  { %v239_v52 = vmul.f32 %v1875_v44, %v105_v47  ;;  %v244_v45 = vmul.f32 %v1875_v44, %v130_v43  ;;  %v453_v47 = vmul.f32 %v1887_v49, %v1935_v25 }
  0xd9   :  { %1459 = vmatmul.mubr.msk.f32.gmra.mrb[12].mxu1 %vm554_vm1, %v529_v46 }
  0xda   :  { %1461 = vmatprep.mubr.msk.f32.mxu1 %vm1684_vm0, %v1685_v12  ;;  %v278_v57 = vadd.f32 %v1882_v48, %v239_v52  ;;  %v283_v52 = vadd.f32 %v1882_v48, %v244_v45 }
  0xdc   :  { %v338_v54 = vpop.permute.xlu1 %337 }
  0xdd   :  { %v448_v58 = vmul.f32 %v1887_v49, %v338_v54 }
  0xdf   :  { %v481_v60 = vadd.f32 %v448_v58, %v278_v57  ;;  %v298_v57 = vadd.f32 %v1882_v48, %v259_v51  ;;  %v486_v58 = vadd.f32 %v453_v47, %v283_v52 }
  0xe0   :  { %v402_v61 = vpop.permute.xlu1 %401 }
  0xe1   :  { %v514_v63 = vmax.f32 %v481_v60, 0.0  ;;  %v464_v1 = vmul.f32 %v1887_v49, %v402_v61  ;;  %v519_v25 = vmax.f32 %v486_v58, 0.0 }
  0xe3   :  { %v497_v2 = vadd.f32 %v464_v1, %v294_v59  ;;  %1414 = vmatmul.mubr.msk.f32.gmra.mrb[16].mxu0 %vm554_vm1, %v514_v63 }
  0xe4   :  { %1416 = vmatprep.mubr.msk.f32.mxu0 %vm1684_vm0, %v1685_v12 }
  0xe5   :  { %v530_v3 = vmax.f32 %v497_v2, 0.0  ;;  %v190_v4 = vpop.permute.xlu1 %189  ;;  %v215_v2 = vpop.permute.xlu0 %214 }
  0xe6   :  { %v256_v6 = vmul.f32 %v1875_v44, %v190_v4 }
  0xe7   :  { %1417 = vmatmul.mubr.msk.f32.gmra.mrb[18].mxu0 %vm554_vm1, %v515_v20  ;;  %1462 = vmatmul.mubr.msk.f32.gmra.mrb[14].mxu1 %vm554_vm1, %v530_v3 }
  0xe8   :  { %1464 = vmatprep.mubr.msk.f32.mxu1 %vm1684_vm0, %v1685_v12  ;;  %1419 = vmatprep.mubr.msk.f32.mxu0 %vm1684_vm0, %v1685_v12  ;;  %v295_v8 = vadd.f32 %v1882_v48, %v256_v6 }
  0xe9   :  { %v140_v7 = vpop.permute.xlu0 %139 }
  0xea   :  { %v406_v0 = vpop.permute.xlu1 %405 }
  0xeb   :  { %v465_v9 = vmul.f32 %v1887_v49, %v406_v0 }
  0xed   :  { %v498_v10 = vadd.f32 %v465_v9, %v295_v8  ;;  %v246_v9 = vmul.f32 %v1875_v44, %v140_v7 }
  0xef   :  { %v531_v11 = vmax.f32 %v498_v10, 0.0  ;;  %v115_v13 = vpop.permute.xlu1 %114  ;;  %v285_v14 = vadd.f32 %v1882_v48, %v246_v9 }
  0xf0   :  { %v241_v17 = vmul.f32 %v1875_v44, %v115_v13  ;;  %v261_v13 = vmul.f32 %v1875_v44, %v215_v2 }
  0xf1   :  { %1465 = vmatmul.mubr.msk.f32.gmra.mrb[16].mxu1 %vm554_vm1, %v531_v11 }
  0xf2   :  { %1467 = vmatprep.mubr.msk.f32.mxu1 %vm1684_vm0, %v1685_v12  ;;  %v280_v22 = vadd.f32 %v1882_v48, %v241_v17  ;;  %v300_v21 = vadd.f32 %v1882_v48, %v261_v13 }
  0xf4   :  { %v346_v19 = vpop.permute.xlu1 %345 }
  0xf5   :  { %v450_v24 = vmul.f32 %v1887_v49, %v346_v19 }
  0xf7   :  { %v483_v28 = vadd.f32 %v450_v24, %v280_v22  ;;  %v488_v22 = vadd.f32 %v455_v18, %v285_v14 }
  0xf8   :  { %v410_v40 = vpop.permute.xlu1 %409 }
  0xf9   :  { %v516_v30 = vmax.f32 %v483_v28, 0.0  ;;  %v466_v31 = vmul.f32 %v1887_v49, %v410_v40  ;;  %v521_v40 = vmax.f32 %v488_v22, 0.0 }
  0xfb   :  { %v499_v32 = vadd.f32 %v466_v31, %v296_v27  ;;  %1420 = vmatmul.mubr.msk.f32.gmra.mrb[20].mxu0 %vm554_vm1, %v516_v30 }
  0xfc   :  { %1422 = vmatprep.mubr.msk.f32.mxu0 %vm1684_vm0, %v1685_v12 }
  0xfd   :  { %v532_v33 = vmax.f32 %v499_v32, 0.0  ;;  %v200_v34 = vpop.permute.xlu1 %199 }
  0xfe   :  { %v258_v35 = vmul.f32 %v1875_v44, %v200_v34 }
  0xff   :  { %1423 = vmatmul.mubr.msk.f32.gmra.mrb[22].mxu0 %vm554_vm1, %v517_v23  ;;  %1468 = vmatmul.mubr.msk.f32.gmra.mrb[18].mxu1 %vm554_vm1, %v532_v33 }
 0x100   :  { %1470 = vmatprep.mubr.msk.f32.mxu1 %vm1684_vm0, %v1685_v12  ;;  %1425 = vmatprep.mubr.msk.f32.mxu0 %vm1684_vm0, %v1685_v12  ;;  %v297_v37 = vadd.f32 %v1882_v48, %v258_v35 }
 0x102   :  { %v414_v16 = vpop.permute.xlu1 %413 }
 0x103   :  { %v467_v38 = vmul.f32 %v1887_v49, %v414_v16  ;;  %v225_v16 = vpop.permute.xlu0 %224 }
 0x105   :  { %v500_v39 = vadd.f32 %v467_v38, %v297_v37  ;;  %v263_v38 = vmul.f32 %v1875_v44, %v225_v16 }
 0x107   :  { %v533_v41 = vmax.f32 %v500_v39, 0.0  ;;  %v125_v42 = vpop.permute.xlu1 %124  ;;  %v302_v45 = vadd.f32 %v1882_v48, %v263_v38 }
 0x108   :  { %v243_v46 = vmul.f32 %v1875_v44, %v125_v42 }
 0x109   :  { %1471 = vmatmul.mubr.msk.f32.gmra.mrb[20].mxu1 %vm554_vm1, %v533_v41 }
 0x10a   :  { %1473 = vmatprep.mubr.msk.f32.mxu1 %vm1684_vm0, %v1685_v12  ;;  %v282_v53 = vadd.f32 %v1882_v48, %v243_v46 }
 0x10c   :  { %v354_v50 = vpop.permute.xlu1 %353 }
 0x10d   :  { %v452_v54 = vmul.f32 %v1887_v49, %v354_v50 }
 0x10f   :  { %v485_v55 = vadd.f32 %v452_v54, %v282_v53 }
 0x110   :  { %v418_v56 = vpop.permute.xlu1 %417 }
 0x111   :  { %v518_v59 = vmax.f32 %v485_v55, 0.0  ;;  %v468_v60 = vmul.f32 %v1887_v49, %v418_v56 }
 0x113   :  { %v501_v61 = vadd.f32 %v468_v60, %v298_v57  ;;  %1426 = vmatmul.mubr.msk.f32.gmra.mrb[24].mxu0 %vm554_vm1, %v518_v59 }
 0x114   :  { %1428 = vmatprep.mubr.msk.f32.mxu0 %vm1684_vm0, %v1685_v12 }
 0x115   :  { %v534_v62 = vmax.f32 %v501_v61, 0.0  ;;  %v210_v63 = vpop.permute.xlu1 %209 }
 0x116   :  { %v260_v1 = vmul.f32 %v1875_v44, %v210_v63 }
 0x117   :  { %1429 = vmatmul.mubr.msk.f32.gmra.mrb[26].mxu0 %vm554_vm1, %v519_v25  ;;  %1474 = vmatmul.mubr.msk.f32.gmra.mrb[22].mxu1 %vm554_vm1, %v534_v62 }
 0x118   :  { %1476 = vmatprep.mubr.msk.f32.mxu1 %vm1684_vm0, %v1685_v12  ;;  %1431 = vmatprep.mubr.msk.f32.mxu0 %vm1684_vm0, %v1685_v12  ;;  %v299_v3 = vadd.f32 %v1882_v48, %v260_v1 }
 0x11a   :  { %v422_v20 = vpop.permute.xlu1 %421 }
 0x11b   :  { %v469_v4 = vmul.f32 %v1887_v49, %v422_v20 }
 0x11d   :  { %v502_v6 = vadd.f32 %v469_v4, %v299_v3 }
 0x11f   :  { %v535_v0 = vmax.f32 %v502_v6, 0.0  ;;  %v135_v8 = vpop.permute.xlu1 %134 }
 0x120   :  { %v245_v10 = vmul.f32 %v1875_v44, %v135_v8 }
 0x121   :  { %1477 = vmatmul.mubr.msk.f32.gmra.mrb[24].mxu1 %vm554_vm1, %v535_v0 }
 0x122   :  { %1479 = vmatprep.mubr.msk.f32.mxu1 %vm1684_vm0, %v1685_v12  ;;  %v284_v15 = vadd.f32 %v1882_v48, %v245_v10 }
 0x124   :  { %v362_v11 = vpop.permute.xlu1 %361 }
 0x125   :  { %v454_v17 = vmul.f32 %v1887_v49, %v362_v11 }
 0x127   :  { %v487_v19 = vadd.f32 %v454_v17, %v284_v15 }
 0x128   :  { %v426_v5 = vpop.permute.xlu1 %425 }
 0x129   :  { %v520_v24 = vmax.f32 %v487_v19, 0.0  ;;  %v470_v27 = vmul.f32 %v1887_v49, %v426_v5 }
 0x12b   :  { %v503_v28 = vadd.f32 %v470_v27, %v300_v21  ;;  %1432 = vmatmul.mubr.msk.f32.gmra.mrb[28].mxu0 %vm554_vm1, %v520_v24 }
 0x12c   :  { %1434 = vmatprep.mubr.msk.f32.mxu0 %vm1684_vm0, %v1685_v12 }
 0x12d   :  { %v536_v29 = vmax.f32 %v503_v28, 0.0  ;;  %v220_v30 = vpop.permute.xlu1 %219 }
 0x12e   :  { %v262_v31 = vmul.f32 %v1875_v44, %v220_v30 }
 0x12f   :  { %1435 = vmatmul.mubr.msk.f32.gmra.mrb[30].mxu0 %vm554_vm1, %v521_v40  ;;  %1480 = vmatmul.mubr.msk.f32.gmra.mrb[26].mxu1 %vm554_vm1, %v536_v29 }
 0x130   :  { %1482 = vmatprep.mubr.msk.f32.mxu1 %vm1684_vm0, %v1685_v12  ;;  %1437 = vmatprep.mubr.msk.f32.mxu0 %vm1684_vm0, %v1685_v12  ;;  %v301_v32 = vadd.f32 %v1882_v48, %v262_v31 }
 0x132   :  { %v430_v26 = vpop.permute.xlu1 %429 }
 0x133   :  { %v471_v23 = vmul.f32 %v1887_v49, %v430_v26 }
 0x135   :  { %v504_v33 = vadd.f32 %v471_v23, %v301_v32 }
 0x137   :  { %v537_v34 = vmax.f32 %v504_v33, 0.0  ;;  %v145_v35 = vpop.permute.xlu1 %144 }
 0x138   :  { %v247_v36 = vmul.f32 %v1875_v44, %v145_v35 }
 0x139   :  { %1483 = vmatmul.mubr.msk.f32.gmra.mrb[28].mxu1 %vm554_vm1, %v537_v34 }
 0x13a   :  { %1485 = vmatprep.mubr.msk.f32.mxu1 %vm1684_vm0, %v1685_v12  ;;  %v286_v39 = vadd.f32 %v1882_v48, %v247_v36  ;;  %v2131_v12 = vld [vmem:[%s2411_s4] ss:$0 sm:$0xff] }
 0x13b   :  { %v2137_v48 = vld [vmem:[%s2412_s5] ss:$0 sm:$0xff] }
 0x13c   :  { %v370_v37 = vpop.permute.xlu1 %369 }
 0x13d   :  { %v456_v41 = vmul.f32 %v1887_v49, %v370_v37 }
 0x13f   :  { %v489_v42 = vadd.f32 %v456_v41, %v286_v39 }
 0x140   :  { %v434_v43 = vpop.permute.xlu1 %433 }
 0x141   :  { %v522_v46 = vmax.f32 %v489_v42, 0.0  ;;  %v472_v47 = vmul.f32 %v1887_v49, %v434_v43 }
 0x143   :  { %v505_v50 = vadd.f32 %v472_v47, %v302_v45  ;;  %1438 = vmatmul.mubr.msk.f32.gmra.mrb[32].mxu0 %vm554_vm1, %v522_v46 }
 0x145   :  { %v538_v51 = vmax.f32 %v505_v50, 0.0 }
 0x147   :  { %1486 = vmatmul.mubr.msk.f32.gmra.mrb[30].mxu1 %vm554_vm1, %v538_v51 }
 0x160   :  { %v720_v44 = vpop.f32.mrb[0].mxu0 }
 0x161   :  { %v721_v52 = vadd.f32 %v2131_v12, %v720_v44  ;;  %v1391_v53 = vpop.f32.mrb[1].mxu0 }
 0x163   :  { %v884_v49 = vmax.f32 %v721_v52, 0.0 }
 0x164   :  { %v725_v54 = vpop.f32.mrb[2].mxu0 }
 0x165   :  { %v726_v55 = vadd.f32 %v2131_v12, %v725_v54  ;;  %v805_v56 = vpop.f32.mrb[0].mxu1  ;;  %v1394_v57 = vpop.f32.mrb[3].mxu0  ;;  %v924_v58 = vmul.f32 %v2137_v48, %v884_v49 }
 0x166   :  { %v806_v59 = vadd.f32 %v2131_v12, %v805_v56  ;;  %v1442_v60 = vpop.f32.mrb[1].mxu1 }
 0x167   :  { %v885_v61 = vmax.f32 %v726_v55, 0.0  ;;  %v957_v25 = vsel %vm554_vm1, %v924_v58, 0.0 }
 0x168   :  { %v901_v62 = vmax.f32 %v806_v59, 0.0  ;;  %958 = vadd.xlane.f32.xlu0 %v957_v25 }
 0x169   :  { %v925_v63 = vmul.f32 %v2137_v48, %v885_v61 }
 0x16a   :  { %v941_v1 = vmul.f32 %v2137_v48, %v901_v62 }
 0x16b   :  { %v960_v2 = vsel %vm554_vm1, %v925_v63, 0.0 }
 0x16c   :  { %961 = vadd.xlane.f32.xlu1 %v960_v2  ;;  %v1008_v20 = vsel %vm554_vm1, %v941_v1, 0.0 }
 0x16d   :  { %1009 = vadd.xlane.f32.xlu0 %v1008_v20 }
 0x16e   :  { %v730_v3 = vpop.f32.mrb[4].mxu0 }
 0x16f   :  { %v731_v4 = vadd.f32 %v2131_v12, %v730_v3  ;;  %v1397_v6 = vpop.f32.mrb[5].mxu0 }
 0x171   :  { %v886_v7 = vmax.f32 %v731_v4, 0.0 }
 0x173   :  { %v926_v0 = vmul.f32 %v2137_v48, %v886_v7 }
 0x175   :  { %v963_v8 = vsel %vm554_vm1, %v926_v0, 0.0 }
 0x176   :  { %964 = vadd.xlane.f32.xlu0 %v963_v8 }
 0x187   :  { %v810_v9 = vpop.f32.mrb[2].mxu1 }
 0x188   :  { %v811_v10 = vadd.f32 %v2131_v12, %v810_v9  ;;  %v1445_v11 = vpop.f32.mrb[3].mxu1 }
 0x18a   :  { %v902_v13 = vmax.f32 %v811_v10, 0.0 }
 0x18b   :  { %v735_v14 = vpop.f32.mrb[6].mxu0 }
 0x18c   :  { %v815_v15 = vpop.f32.mrb[4].mxu1  ;;  %v736_v17 = vadd.f32 %v2131_v12, %v735_v14  ;;  %v1400_v18 = vpop.f32.mrb[7].mxu0  ;;  %v942_v19 = vmul.f32 %v2137_v48, %v902_v13 }
 0x18d   :  { %v816_v5 = vadd.f32 %v2131_v12, %v815_v15  ;;  %v1448_v21 = vpop.f32.mrb[5].mxu1 }
 0x18e   :  { %v887_v22 = vmax.f32 %v736_v17, 0.0  ;;  %v1011_v24 = vsel %vm554_vm1, %v942_v19, 0.0 }
 0x18f   :  { %v903_v27 = vmax.f32 %v816_v5, 0.0  ;;  %1012 = vadd.xlane.f32.xlu1 %v1011_v24  ;;  %v740_v28 = vpop.f32.mrb[8].mxu0 }
 0x190   :  { %v741_v40 = vadd.f32 %v2131_v12, %v740_v28  ;;  %v820_v29 = vpop.f32.mrb[6].mxu1  ;;  %v1403_v30 = vpop.f32.mrb[9].mxu0  ;;  %v927_v23 = vmul.f32 %v2137_v48, %v887_v22 }
 0x191   :  { %v821_v31 = vadd.f32 %v2131_v12, %v820_v29  ;;  %v1451_v26 = vpop.f32.mrb[7].mxu1  ;;  %v943_v32 = vmul.f32 %v2137_v48, %v903_v27 }
 0x192   :  { %v888_v33 = vmax.f32 %v741_v40, 0.0  ;;  %v966_v43 = vsel %vm554_vm1, %v927_v23, 0.0 }
 0x193   :  { %v904_v34 = vmax.f32 %v821_v31, 0.0  ;;  %v1014_v35 = vsel %vm554_vm1, %v943_v32, 0.0  ;;  %v745_v36 = vpop.f32.mrb[10].mxu0 }
 0x194   :  { %1015 = vadd.xlane.f32.xlu0 %v1014_v35  ;;  %v825_v16 = vpop.f32.mrb[8].mxu1  ;;  %v746_v37 = vadd.f32 %v2131_v12, %v745_v36  ;;  %v1406_v38 = vpop.f32.mrb[11].mxu0  ;;  %v928_v50 = vmul.f32 %v2137_v48, %v888_v33 }
 0x195   :  { %v826_v39 = vadd.f32 %v2131_v12, %v825_v16  ;;  %v1454_v41 = vpop.f32.mrb[9].mxu1  ;;  %v944_v42 = vmul.f32 %v2137_v48, %v904_v34 }
 0x196   :  { %v889_v45 = vmax.f32 %v746_v37, 0.0  ;;  %v969_v52 = vsel %vm554_vm1, %v928_v50, 0.0 }
 0x197   :  { %v905_v46 = vmax.f32 %v826_v39, 0.0  ;;  %v1017_v47 = vsel %vm554_vm1, %v944_v42, 0.0 }
 0x198   :  { %1018 = vadd.xlane.f32.xlu1 %v1017_v47  ;;  %967 = vadd.xlane.f32.xlu0 %v966_v43  ;;  %v929_v44 = vmul.f32 %v2137_v48, %v889_v45 }
 0x199   :  { %v945_v51 = vmul.f32 %v2137_v48, %v905_v46 }
 0x19a   :  { %v972_v49 = vsel %vm554_vm1, %v929_v44, 0.0 }
 0x19b   :  { %v1020_v53 = vsel %vm554_vm1, %v945_v51, 0.0 }
 0x19c   :  { %970 = vadd.xlane.f32.xlu1 %v969_v52  ;;  %1021 = vadd.xlane.f32.xlu0 %v1020_v53 }
 0x19e   :  { %v750_v54 = vpop.f32.mrb[12].mxu0 }
 0x19f   :  { %v1409_v55 = vpop.f32.mrb[13].mxu0  ;;  %v751_v56 = vadd.f32 %v2131_v12, %v750_v54 }
 0x1a0   :  { %973 = vadd.xlane.f32.xlu0 %v972_v49 }
 0x1a1   :  { %v890_v25 = vmax.f32 %v751_v56, 0.0 }
 0x1a2   :  { %v830_v57 = vpop.f32.mrb[10].mxu1  ;;  %v755_v58 = vpop.f32.mrb[14].mxu0 }
 0x1a3   :  { %v831_v59 = vadd.f32 %v2131_v12, %v830_v57  ;;  %v1457_v60 = vpop.f32.mrb[11].mxu1  ;;  %v1412_v61 = vpop.f32.mrb[15].mxu0  ;;  %v930_v2 = vmul.f32 %v2137_v48, %v890_v25  ;;  %v756_v20 = vadd.f32 %v2131_v12, %v755_v58 }
 0x1a5   :  { %v906_v62 = vmax.f32 %v831_v59, 0.0  ;;  %v975_v7 = vsel %vm554_vm1, %v930_v2, 0.0  ;;  %v891_v0 = vmax.f32 %v756_v20, 0.0 }
 0x1a7   :  { %v946_v63 = vmul.f32 %v2137_v48, %v906_v62  ;;  %v931_v10 = vmul.f32 %v2137_v48, %v891_v0 }
 0x1a9   :  { %v1023_v1 = vsel %vm554_vm1, %v946_v63, 0.0  ;;  %v978_v13 = vsel %vm554_vm1, %v931_v10, 0.0 }
 0x1aa   :  { %1024 = vadd.xlane.f32.xlu1 %v1023_v1 }
 0x1ac   :  { %v835_v3 = vpop.f32.mrb[12].mxu1 }
 0x1ad   :  { %v836_v4 = vadd.f32 %v2131_v12, %v835_v3  ;;  %v1460_v6 = vpop.f32.mrb[13].mxu1 }
 0x1ae   :  { %976 = vadd.xlane.f32.xlu1 %v975_v7 }
 0x1af   :  { %v907_v8 = vmax.f32 %v836_v4, 0.0 }
 0x1b1   :  { %v947_v9 = vmul.f32 %v2137_v48, %v907_v8 }
 0x1b3   :  { %v1026_v11 = vsel %vm554_vm1, %v947_v9, 0.0 }
 0x1b4   :  { %1027 = vadd.xlane.f32.xlu0 %v1026_v11 }
 0x1b6   :  { %v760_v14 = vpop.f32.mrb[16].mxu0 }
 0x1b7   :  { %v1415_v15 = vpop.f32.mrb[17].mxu0  ;;  %v761_v17 = vadd.f32 %v2131_v12, %v760_v14 }
 0x1b8   :  { %979 = vadd.xlane.f32.xlu0 %v978_v13 }
 0x1b9   :  { %v892_v24 = vmax.f32 %v761_v17, 0.0 }
 0x1ba   :  { %v765_v18 = vpop.f32.mrb[18].mxu0  ;;  %v840_v19 = vpop.f32.mrb[14].mxu1 }
 0x1bb   :  { %v841_v5 = vadd.f32 %v2131_v12, %v840_v19  ;;  %v1418_v21 = vpop.f32.mrb[19].mxu0  ;;  %v1463_v22 = vpop.f32.mrb[15].mxu1  ;;  %v932_v29 = vmul.f32 %v2137_v48, %v892_v24  ;;  %v766_v30 = vadd.f32 %v2131_v12, %v765_v18  ;;  %v2217_v18 = vstv %s2413_s6 }
 0x1bd   :  { %v908_v27 = vmax.f32 %v841_v5, 0.0  ;;  %v981_v23 = vsel %vm554_vm1, %v932_v29, 0.0  ;;  %v893_v33 = vmax.f32 %v766_v30, 0.0 }
 0x1bf   :  { %v948_v28 = vmul.f32 %v2137_v48, %v908_v27  ;;  %v933_v16 = vmul.f32 %v2137_v48, %v893_v33 }
 0x1c1   :  { %v1029_v40 = vsel %vm554_vm1, %v948_v28, 0.0  ;;  %v984_v39 = vsel %vm554_vm1, %v933_v16, 0.0 }
 0x1c2   :  { %1030 = vadd.xlane.f32.xlu1 %v1029_v40 }
 0x1c4   :  { %v845_v31 = vpop.f32.mrb[16].mxu1 }
 0x1c5   :  { %v846_v26 = vadd.f32 %v2131_v12, %v845_v31  ;;  %v1466_v32 = vpop.f32.mrb[17].mxu1 }
 0x1c6   :  { %982 = vadd.xlane.f32.xlu1 %v981_v23 }
 0x1c7   :  { %v909_v34 = vmax.f32 %v846_v26, 0.0 }
 0x1c9   :  { %v949_v35 = vmul.f32 %v2137_v48, %v909_v34 }
 0x1cb   :  { %v1032_v36 = vsel %vm554_vm1, %v949_v35, 0.0 }
 0x1cc   :  { %1033 = vadd.xlane.f32.xlu0 %v1032_v36 }
 0x1ce   :  { %v770_v37 = vpop.f32.mrb[20].mxu0 }
 0x1cf   :  { %v1421_v38 = vpop.f32.mrb[21].mxu0  ;;  %v771_v41 = vadd.f32 %v2131_v12, %v770_v37 }
 0x1d0   :  { %985 = vadd.xlane.f32.xlu0 %v984_v39 }
 0x1d1   :  { %v894_v50 = vmax.f32 %v771_v41, 0.0 }
 0x1d2   :  { %v775_v42 = vpop.f32.mrb[22].mxu0  ;;  %v850_v43 = vpop.f32.mrb[18].mxu1 }
 0x1d3   :  { %v851_v45 = vadd.f32 %v2131_v12, %v850_v43  ;;  %v1424_v46 = vpop.f32.mrb[23].mxu0  ;;  %v1469_v47 = vpop.f32.mrb[19].mxu1  ;;  %v934_v52 = vmul.f32 %v2137_v48, %v894_v50  ;;  %v776_v49 = vadd.f32 %v2131_v12, %v775_v42 }
 0x1d5   :  { %v910_v51 = vmax.f32 %v851_v45, 0.0  ;;  %v987_v57 = vsel %vm554_vm1, %v934_v52, 0.0  ;;  %v895_v58 = vmax.f32 %v776_v49, 0.0 }
 0x1d7   :  { %v950_v44 = vmul.f32 %v2137_v48, %v910_v51  ;;  %v935_v25 = vmul.f32 %v2137_v48, %v895_v58 }
 0x1d9   :  { %v1035_v53 = vsel %vm554_vm1, %v950_v44, 0.0  ;;  %v990_v1 = vsel %vm554_vm1, %v935_v25, 0.0 }
 0x1da   :  { %1036 = vadd.xlane.f32.xlu1 %v1035_v53 }
 0x1dc   :  { %v855_v54 = vpop.f32.mrb[20].mxu1 }
 0x1dd   :  { %v856_v55 = vadd.f32 %v2131_v12, %v855_v54  ;;  %v1472_v56 = vpop.f32.mrb[21].mxu1 }
 0x1de   :  { %988 = vadd.xlane.f32.xlu1 %v987_v57 }
 0x1df   :  { %v911_v59 = vmax.f32 %v856_v55, 0.0 }
 0x1e1   :  { %v951_v60 = vmul.f32 %v2137_v48, %v911_v59 }
 0x1e3   :  { %v1038_v61 = vsel %vm554_vm1, %v951_v60, 0.0 }
 0x1e4   :  { %1039 = vadd.xlane.f32.xlu0 %v1038_v61 }
 0x1e6   :  { %v780_v62 = vpop.f32.mrb[24].mxu0 }
 0x1e7   :  { %v1427_v63 = vpop.f32.mrb[25].mxu0  ;;  %v781_v2 = vadd.f32 %v2131_v12, %v780_v62 }
 0x1e8   :  { %991 = vadd.xlane.f32.xlu0 %v990_v1 }
 0x1e9   :  { %v896_v0 = vmax.f32 %v781_v2, 0.0 }
 0x1ea   :  { %v785_v20 = vpop.f32.mrb[26].mxu0  ;;  %v860_v3 = vpop.f32.mrb[22].mxu1 }
 0x1eb   :  { %v861_v4 = vadd.f32 %v2131_v12, %v860_v3  ;;  %v1430_v6 = vpop.f32.mrb[27].mxu0  ;;  %v1475_v7 = vpop.f32.mrb[23].mxu1  ;;  %v936_v10 = vmul.f32 %v2137_v48, %v896_v0  ;;  %v786_v13 = vadd.f32 %v2131_v12, %v785_v20 }
 0x1ed   :  { %v912_v8 = vmax.f32 %v861_v4, 0.0  ;;  %v993_v5 = vsel %vm554_vm1, %v936_v10, 0.0  ;;  %v897_v22 = vmax.f32 %v786_v13, 0.0 }
 0x1ef   :  { %v952_v9 = vmul.f32 %v2137_v48, %v912_v8  ;;  %v937_v23 = vmul.f32 %v2137_v48, %v897_v22 }
 0x1f1   :  { %v1041_v11 = vsel %vm554_vm1, %v952_v9, 0.0  ;;  %v996_v38 = vsel %vm554_vm1, %v937_v23, 0.0 }
 0x1f2   :  { %1042 = vadd.xlane.f32.xlu1 %v1041_v11 }
 0x1f4   :  { %v865_v14 = vpop.f32.mrb[24].mxu1 }
 0x1f5   :  { %v866_v15 = vadd.f32 %v2131_v12, %v865_v14  ;;  %v1478_v17 = vpop.f32.mrb[25].mxu1  ;;  %v959_v19 = vpop.xlane.xlu0 %958 }
 0x1f6   :  { %v1058_v21 = vadd.f32 %v2217_v18, %v959_v19  ;;  %994 = vadd.xlane.f32.xlu1 %v993_v5 }
 0x1f7   :  { %v913_v24 = vmax.f32 %v866_v15, 0.0 }
 0x1f8   :  { %v1091_v27 = vsub.f32 0.0, %v1058_v21 }
 0x1f9   :  { %v962_v28 = vpop.xlane.xlu1 %961  ;;  %v953_v40 = vmul.f32 %v2137_v48, %v913_v24 }
 0x1fa   :  { %v1124_v29 = vmul.f32 1.442695, %v1091_v27  ;;  %v1059_v30 = vadd.f32 %v2217_v18, %v962_v28  ;;  %v1010_v31 = vpop.xlane.xlu0 %1009 }
 0x1fb   :  { %v1075_v26 = vadd.f32 %v2217_v18, %v1010_v31  ;;  %v1044_v32 = vsel %vm554_vm1, %v953_v40, 0.0 }
 0x1fc   :  { %1549 = vpow2.f32 %v1124_v29  ;;  %v1092_v33 = vsub.f32 0.0, %v1059_v30  ;;  %1045 = vadd.xlane.f32.xlu0 %v1044_v32 }
 0x1fd   :  { %v1108_v34 = vsub.f32 0.0, %v1075_v26 }
 0x1fe   :  { %v1126_v35 = vmul.f32 1.442695, %v1092_v33  ;;  %v790_v36 = vpop.f32.mrb[28].mxu0 }
 0x1ff   :  { %v1158_v16 = vmul.f32 1.442695, %v1108_v34  ;;  %v1433_v37 = vpop.f32.mrb[29].mxu0  ;;  %v791_v39 = vadd.f32 %v2131_v12, %v790_v36 }
 0x200   :  { %1551 = vpow2.f32 %v1126_v35  ;;  %997 = vadd.xlane.f32.xlu0 %v996_v38 }
 0x201   :  { %1553 = vpow2.f32 %v1158_v16  ;;  %v898_v50 = vmax.f32 %v791_v39, 0.0 }
 0x202   :  { %v795_v41 = vpop.f32.mrb[30].mxu0  ;;  %v870_v42 = vpop.f32.mrb[26].mxu1 }
 0x203   :  { %v796_v43 = vadd.f32 %v2131_v12, %v795_v41  ;;  %v871_v45 = vadd.f32 %v2131_v12, %v870_v42  ;;  %v1436_v46 = vpop.f32.mrb[31].mxu0  ;;  %v1481_v47 = vpop.f32.mrb[27].mxu1  ;;  %v938_v58 = vmul.f32 %v2137_v48, %v898_v50 }
 0x204   :  { %v965_v51 = vpop.xlane.xlu0 %964 }
 0x205   :  { %v899_v44 = vmax.f32 %v796_v43, 0.0  ;;  %v914_v52 = vmax.f32 %v871_v45, 0.0  ;;  %v1060_v53 = vadd.f32 %v2217_v18, %v965_v51  ;;  %v999_v4 = vsel %vm554_vm1, %v938_v58, 0.0 }
 0x206   :  { %v1550_v49 = vpop.eup %1549 }
 0x207   :  { %v1190_v54 = vadd.f32 1.0, %v1550_v49  ;;  %v954_v55 = vmul.f32 %v2137_v48, %v914_v52  ;;  %v1093_v56 = vsub.f32 0.0, %v1060_v53  ;;  %v939_v57 = vmul.f32 %v2137_v48, %v899_v44 }
 0x209   :  { %1555 = vrcp.f32 %v1190_v54  ;;  %v1128_v59 = vmul.f32 1.442695, %v1093_v56  ;;  %v1047_v60 = vsel %vm554_vm1, %v954_v55, 0.0  ;;  %v1002_v61 = vsel %vm554_vm1, %v939_v57, 0.0 }
 0x20a   :  { %v1552_v25 = vpop.eup %1551  ;;  %1048 = vadd.xlane.f32.xlu1 %v1047_v60  ;;  %1003 = vadd.xlane.f32.xlu0 %v1002_v61 }
 0x20b   :  { %v1554_v62 = vpop.eup %1553  ;;  %v1191_v63 = vadd.f32 1.0, %v1552_v25  ;;  %1557 = vpow2.f32 %v1128_v59 }
 0x20c   :  { %v1207_v1 = vadd.f32 1.0, %v1554_v62  ;;  %v875_v2 = vpop.f32.mrb[28].mxu1 }
 0x20d   :  { %1559 = vrcp.f32 %v1191_v63  ;;  %v876_v20 = vadd.f32 %v2131_v12, %v875_v2  ;;  %v1484_v3 = vpop.f32.mrb[29].mxu1 }
 0x20e   :  { %1561 = vrcp.f32 %v1207_v1  ;;  %1000 = vadd.xlane.f32.xlu1 %v999_v4 }
 0x20f   :  { %v915_v6 = vmax.f32 %v876_v20, 0.0 }
 0x211   :  { %v955_v7 = vmul.f32 %v2137_v48, %v915_v6 }
 0x213   :  { %v1556_v0 = vpop.eup %1555  ;;  %v1050_v8 = vsel %vm554_vm1, %v955_v7, 0.0 }
 0x214   :  { %1257 = vst.msk [vmem:[%s2414_s7] sm:$0xff] %vm1256_vm2, %v1556_v0  ;;  %1051 = vadd.xlane.f32.xlu0 %v1050_v8 }
 0x215   :  { %v1558_v9 = vpop.eup %1557 }
 0x216   :  { %v1192_v10 = vadd.f32 1.0, %v1558_v9  ;;  %v800_v11 = vpop.f32.mrb[32].mxu0 }
 0x217   :  { %v1560_v13 = vpop.eup %1559  ;;  %v801_v14 = vadd.f32 %v2131_v12, %v800_v11  ;;  %v1439_v15 = vpop.f32.mrb[33].mxu0 }
 0x218   :  { %v1562_v17 = vpop.eup %1561  ;;  %1258 = vst.msk [vmem:[%s2414_s7 + $0x8] sm:$0xff] %vm1256_vm2, %v1560_v13  ;;  %1563 = vrcp.f32 %v1192_v10 }
 0x219   :  { %1274 = vst.msk [vmem:[%s2414_s7 + $0x88] sm:$0xff] %vm1256_vm2, %v1562_v17  ;;  %v900_v19 = vmax.f32 %v801_v14, 0.0 }
 0x21a   :  { %v880_v5 = vpop.f32.mrb[30].mxu1 }
 0x21b   :  { %v940_v21 = vmul.f32 %v2137_v48, %v900_v19  ;;  %v881_v22 = vadd.f32 %v2131_v12, %v880_v5  ;;  %v1487_v24 = vpop.f32.mrb[31].mxu1 }
 0x21c   :  { %v1013_v27 = vpop.xlane.xlu1 %1012 }
 0x21d   :  { %v916_v28 = vmax.f32 %v881_v22, 0.0  ;;  %v1076_v40 = vadd.f32 %v2217_v18, %v1013_v27  ;;  %v1005_v29 = vsel %vm554_vm1, %v940_v21, 0.0 }
 0x21e   :  { %1006 = vadd.xlane.f32.xlu1 %v1005_v29 }
 0x21f   :  { %v956_v30 = vmul.f32 %v2137_v48, %v916_v28  ;;  %v1109_v31 = vsub.f32 0.0, %v1076_v40 }
 0x221   :  { %v1160_v26 = vmul.f32 1.442695, %v1109_v31  ;;  %v1016_v32 = vpop.xlane.xlu0 %1015  ;;  %v1053_v23 = vsel %vm554_vm1, %v956_v30, 0.0 }
 0x222   :  { %v1564_v33 = vpop.eup %1563  ;;  %v1077_v34 = vadd.f32 %v2217_v18, %v1016_v32  ;;  %1054 = vadd.xlane.f32.xlu1 %v1053_v23 }
 0x223   :  { %1259 = vst.msk [vmem:[%s2414_s7 + $0x10] sm:$0xff] %vm1256_vm2, %v1564_v33  ;;  %1565 = vpow2.f32 %v1160_v26 }
 0x224   :  { %v1110_v12 = vsub.f32 0.0, %v1077_v34 }
 0x225   :  { %v1019_v35 = vpop.xlane.xlu1 %1018  ;;  %v968_v36 = vpop.xlane.xlu0 %967 }
 0x226   :  { %v1162_v16 = vmul.f32 1.442695, %v1110_v12  ;;  %v1078_v48 = vadd.f32 %v2217_v18, %v1019_v35  ;;  %v1061_v37 = vadd.f32 %v2217_v18, %v968_v36 }
 0x228   :  { %1567 = vpow2.f32 %v1162_v16  ;;  %v1111_v38 = vsub.f32 0.0, %v1078_v48  ;;  %v1094_v39 = vsub.f32 0.0, %v1061_v37 }
 0x229   :  { %v971_v41 = vpop.xlane.xlu1 %970  ;;  %v1022_v42 = vpop.xlane.xlu0 %1021 }
 0x22a   :  { %v1164_v43 = vmul.f32 1.442695, %v1111_v38  ;;  %v1130_v45 = vmul.f32 1.442695, %v1094_v39  ;;  %v1062_v46 = vadd.f32 %v2217_v18, %v971_v41  ;;  %v1079_v47 = vadd.f32 %v2217_v18, %v1022_v42 }
 0x22c   :  { %1569 = vpow2.f32 %v1164_v43  ;;  %v1095_v50 = vsub.f32 0.0, %v1062_v46  ;;  %v1112_v51 = vsub.f32 0.0, %v1079_v47 }
 0x22d   :  { %v1566_v44 = vpop.eup %1565  ;;  %1571 = vpow2.f32 %v1130_v45  ;;  %v974_v52 = vpop.xlane.xlu0 %973 }
 0x22e   :  { %v1208_v53 = vadd.f32 1.0, %v1566_v44  ;;  %v1132_v49 = vmul.f32 1.442695, %v1095_v50  ;;  %v1166_v54 = vmul.f32 1.442695, %v1112_v51  ;;  %v1063_v55 = vadd.f32 %v2217_v18, %v974_v52 }
 0x230   :  { %1573 = vrcp.f32 %v1208_v53  ;;  %v1096_v56 = vsub.f32 0.0, %v1063_v55 }
 0x231   :  { %1575 = vpow2.f32 %v1132_v49 }
 0x232   :  { %v1568_v57 = vpop.eup %1567  ;;  %1577 = vpow2.f32 %v1166_v54  ;;  %v1134_v58 = vmul.f32 1.442695, %v1096_v56 }
 0x233   :  { %v1209_v59 = vadd.f32 1.0, %v1568_v57 }
 0x234   :  { %1579 = vpow2.f32 %v1134_v58 }
 0x235   :  { %1581 = vrcp.f32 %v1209_v59 }
 0x236   :  { %v1570_v60 = vpop.eup %1569 }
 0x237   :  { %v1572_v61 = vpop.eup %1571  ;;  %v1210_v25 = vadd.f32 1.0, %v1570_v60  ;;  %v1025_v62 = vpop.xlane.xlu1 %1024 }
 0x238   :  { %v1193_v63 = vadd.f32 1.0, %v1572_v61  ;;  %v1080_v1 = vadd.f32 %v2217_v18, %v1025_v62 }
 0x239   :  { %1583 = vrcp.f32 %v1210_v25 }
 0x23a   :  { %v1574_v2 = vpop.eup %1573  ;;  %1585 = vrcp.f32 %v1193_v63  ;;  %v1113_v20 = vsub.f32 0.0, %v1080_v1 }
 0x23b   :  { %v1576_v3 = vpop.eup %1575  ;;  %1275 = vst.msk [vmem:[%s2414_s7 + $0x90] sm:$0xff] %vm1256_vm2, %v1574_v2  ;;  %v977_v4 = vpop.xlane.xlu1 %976 }
 0x23c   :  { %v1578_v6 = vpop.eup %1577  ;;  %v1194_v7 = vadd.f32 1.0, %v1576_v3  ;;  %v1168_v0 = vmul.f32 1.442695, %v1113_v20  ;;  %v1064_v8 = vadd.f32 %v2217_v18, %v977_v4 }
 0x23d   :  { %v1211_v9 = vadd.f32 1.0, %v1578_v6 }
 0x23e   :  { %v1580_v10 = vpop.eup %1579  ;;  %1587 = vrcp.f32 %v1194_v7  ;;  %v1097_v11 = vsub.f32 0.0, %v1064_v8 }
 0x23f   :  { %v1582_v13 = vpop.eup %1581  ;;  %1589 = vrcp.f32 %v1211_v9  ;;  %v1195_v14 = vadd.f32 1.0, %v1580_v10 }
 0x240   :  { %1276 = vst.msk [vmem:[%s2414_s7 + $0x98] sm:$0xff] %vm1256_vm2, %v1582_v13  ;;  %1591 = vpow2.f32 %v1168_v0  ;;  %v1136_v15 = vmul.f32 1.442695, %v1097_v11 }
 0x241   :  { %1593 = vrcp.f32 %v1195_v14  ;;  %v1028_v17 = vpop.xlane.xlu0 %1027 }
 0x242   :  { %1595 = vpow2.f32 %v1136_v15  ;;  %v1081_v19 = vadd.f32 %v2217_v18, %v1028_v17 }
 0x243   :  { %v1584_v5 = vpop.eup %1583 }
 0x244   :  { %v1586_v21 = vpop.eup %1585  ;;  %1277 = vst.msk [vmem:[%s2414_s7 + $0xa0] sm:$0xff] %vm1256_vm2, %v1584_v5  ;;  %v1114_v22 = vsub.f32 0.0, %v1081_v19 }
 0x245   :  { %1260 = vst.msk [vmem:[%s2414_s7 + $0x18] sm:$0xff] %vm1256_vm2, %v1586_v21  ;;  %v980_v24 = vpop.xlane.xlu0 %979 }
 0x246   :  { %v1170_v27 = vmul.f32 1.442695, %v1114_v22  ;;  %v1065_v28 = vadd.f32 %v2217_v18, %v980_v24 }
 0x248   :  { %v1588_v40 = vpop.eup %1587  ;;  %1597 = vpow2.f32 %v1170_v27  ;;  %v1098_v29 = vsub.f32 0.0, %v1065_v28 }
 0x249   :  { %v1590_v30 = vpop.eup %1589  ;;  %1261 = vst.msk [vmem:[%s2414_s7 + $0x20] sm:$0xff] %vm1256_vm2, %v1588_v40 }
 0x24a   :  { %v1592_v31 = vpop.eup %1591  ;;  %1278 = vst.msk [vmem:[%s2414_s7 + $0xa8] sm:$0xff] %vm1256_vm2, %v1590_v30  ;;  %v1138_v26 = vmul.f32 1.442695, %v1098_v29 }
 0x24b   :  { %v1594_v32 = vpop.eup %1593  ;;  %v1212_v23 = vadd.f32 1.0, %v1592_v31 }
 0x24c   :  { %v1596_v33 = vpop.eup %1595  ;;  %1262 = vst.msk [vmem:[%s2414_s7 + $0x28] sm:$0xff] %vm1256_vm2, %v1594_v32  ;;  %1599 = vpow2.f32 %v1138_v26 }
 0x24d   :  { %1601 = vrcp.f32 %v1212_v23  ;;  %v1196_v34 = vadd.f32 1.0, %v1596_v33 }
 0x24f   :  { %1603 = vrcp.f32 %v1196_v34  ;;  %v1031_v12 = vpop.xlane.xlu1 %1030 }
 0x250   :  { %v1082_v35 = vadd.f32 %v2217_v18, %v1031_v12 }
 0x252   :  { %v1598_v36 = vpop.eup %1597  ;;  %v1115_v16 = vsub.f32 0.0, %v1082_v35 }
 0x253   :  { %v1213_v48 = vadd.f32 1.0, %v1598_v36  ;;  %v983_v37 = vpop.xlane.xlu1 %982 }
 0x254   :  { %v1172_v38 = vmul.f32 1.442695, %v1115_v16  ;;  %v1066_v39 = vadd.f32 %v2217_v18, %v983_v37 }
 0x255   :  { %1605 = vrcp.f32 %v1213_v48 }
 0x256   :  { %v1600_v41 = vpop.eup %1599  ;;  %1607 = vpow2.f32 %v1172_v38  ;;  %v1099_v42 = vsub.f32 0.0, %v1066_v39 }
 0x257   :  { %v1602_v43 = vpop.eup %1601  ;;  %v1197_v45 = vadd.f32 1.0, %v1600_v41 }
 0x258   :  { %1279 = vst.msk [vmem:[%s2414_s7 + $0xb0] sm:$0xff] %vm1256_vm2, %v1602_v43  ;;  %v1140_v46 = vmul.f32 1.442695, %v1099_v42 }
 0x259   :  { %v1604_v47 = vpop.eup %1603  ;;  %1609 = vrcp.f32 %v1197_v45  ;;  %v1034_v50 = vpop.xlane.xlu0 %1033 }
 0x25a   :  { %1263 = vst.msk [vmem:[%s2414_s7 + $0x30] sm:$0xff] %vm1256_vm2, %v1604_v47  ;;  %1611 = vpow2.f32 %v1140_v46  ;;  %v1083_v51 = vadd.f32 %v2217_v18, %v1034_v50 }
 0x25c   :  { %v1116_v44 = vsub.f32 0.0, %v1083_v51 }
 0x25d   :  { %v986_v52 = vpop.xlane.xlu0 %985 }
 0x25e   :  { %v1174_v53 = vmul.f32 1.442695, %v1116_v44  ;;  %v1067_v49 = vadd.f32 %v2217_v18, %v986_v52 }
 0x25f   :  { %v1606_v54 = vpop.eup %1605 }
 0x260   :  { %v1608_v55 = vpop.eup %1607  ;;  %1280 = vst.msk [vmem:[%s2414_s7 + $0xb8] sm:$0xff] %vm1256_vm2, %v1606_v54  ;;  %1613 = vpow2.f32 %v1174_v53  ;;  %v1100_v56 = vsub.f32 0.0, %v1067_v49 }
 0x261   :  { %v1214_v57 = vadd.f32 1.0, %v1608_v55 }
 0x262   :  { %v1142_v58 = vmul.f32 1.442695, %v1100_v56 }
 0x263   :  { %v1610_v59 = vpop.eup %1609  ;;  %1615 = vrcp.f32 %v1214_v57 }
 0x264   :  { %v1612_v60 = vpop.eup %1611  ;;  %1264 = vst.msk [vmem:[%s2414_s7 + $0x38] sm:$0xff] %vm1256_vm2, %v1610_v59  ;;  %1617 = vpow2.f32 %v1142_v58 }
 0x265   :  { %v1198_v61 = vadd.f32 1.0, %v1612_v60 }
 0x267   :  { %1619 = vrcp.f32 %v1198_v61  ;;  %v1037_v25 = vpop.xlane.xlu1 %1036 }
 0x268   :  { %v1084_v62 = vadd.f32 %v2217_v18, %v1037_v25 }
 0x26a   :  { %v1614_v63 = vpop.eup %1613  ;;  %v1117_v1 = vsub.f32 0.0, %v1084_v62 }
 0x26b   :  { %v1215_v2 = vadd.f32 1.0, %v1614_v63  ;;  %v989_v20 = vpop.xlane.xlu1 %988 }
 0x26c   :  { %v1176_v3 = vmul.f32 1.442695, %v1117_v1  ;;  %v1068_v4 = vadd.f32 %v2217_v18, %v989_v20 }
 0x26d   :  { %v1616_v6 = vpop.eup %1615  ;;  %1621 = vrcp.f32 %v1215_v2 }
 0x26e   :  { %v1618_v7 = vpop.eup %1617  ;;  %1281 = vst.msk [vmem:[%s2414_s7 + $0xc0] sm:$0xff] %vm1256_vm2, %v1616_v6  ;;  %1623 = vpow2.f32 %v1176_v3  ;;  %v1101_v0 = vsub.f32 0.0, %v1068_v4 }
 0x26f   :  { %v1199_v8 = vadd.f32 1.0, %v1618_v7 }
 0x270   :  { %v1144_v9 = vmul.f32 1.442695, %v1101_v0 }
 0x271   :  { %v1620_v10 = vpop.eup %1619  ;;  %1625 = vrcp.f32 %v1199_v8  ;;  %v1040_v11 = vpop.xlane.xlu0 %1039 }
 0x272   :  { %1265 = vst.msk [vmem:[%s2414_s7 + $0x40] sm:$0xff] %vm1256_vm2, %v1620_v10  ;;  %1627 = vpow2.f32 %v1144_v9  ;;  %v1085_v13 = vadd.f32 %v2217_v18, %v1040_v11 }
 0x274   :  { %v1118_v14 = vsub.f32 0.0, %v1085_v13 }
 0x275   :  { %v992_v15 = vpop.xlane.xlu0 %991 }
 0x276   :  { %v1178_v17 = vmul.f32 1.442695, %v1118_v14  ;;  %v1069_v19 = vadd.f32 %v2217_v18, %v992_v15 }
 0x277   :  { %v1622_v5 = vpop.eup %1621 }
 0x278   :  { %v1624_v21 = vpop.eup %1623  ;;  %1282 = vst.msk [vmem:[%s2414_s7 + $0xc8] sm:$0xff] %vm1256_vm2, %v1622_v5  ;;  %1629 = vpow2.f32 %v1178_v17  ;;  %v1102_v22 = vsub.f32 0.0, %v1069_v19 }
 0x279   :  { %v1216_v24 = vadd.f32 1.0, %v1624_v21 }
 0x27a   :  { %v1146_v27 = vmul.f32 1.442695, %v1102_v22 }
 0x27b   :  { %v1626_v28 = vpop.eup %1625  ;;  %1631 = vrcp.f32 %v1216_v24 }
 0x27c   :  { %v1628_v40 = vpop.eup %1627  ;;  %1266 = vst.msk [vmem:[%s2414_s7 + $0x48] sm:$0xff] %vm1256_vm2, %v1626_v28  ;;  %1633 = vpow2.f32 %v1146_v27 }
 0x27d   :  { %v1200_v29 = vadd.f32 1.0, %v1628_v40 }
 0x27f   :  { %1635 = vrcp.f32 %v1200_v29  ;;  %v1043_v30 = vpop.xlane.xlu1 %1042 }
 0x280   :  { %v1086_v31 = vadd.f32 %v2217_v18, %v1043_v30 }
 0x282   :  { %v1630_v26 = vpop.eup %1629  ;;  %v1119_v32 = vsub.f32 0.0, %v1086_v31 }
 0x283   :  { %v1217_v23 = vadd.f32 1.0, %v1630_v26  ;;  %v995_v33 = vpop.xlane.xlu1 %994 }
 0x284   :  { %v1180_v34 = vmul.f32 1.442695, %v1119_v32  ;;  %v1070_v12 = vadd.f32 %v2217_v18, %v995_v33 }
 0x285   :  { %v1632_v35 = vpop.eup %1631  ;;  %1637 = vrcp.f32 %v1217_v23 }
 0x286   :  { %v1634_v36 = vpop.eup %1633  ;;  %1283 = vst.msk [vmem:[%s2414_s7 + $0xd0] sm:$0xff] %vm1256_vm2, %v1632_v35  ;;  %1639 = vpow2.f32 %v1180_v34  ;;  %v1103_v16 = vsub.f32 0.0, %v1070_v12 }
 0x287   :  { %v1201_v48 = vadd.f32 1.0, %v1634_v36 }
 0x288   :  { %v1148_v37 = vmul.f32 1.442695, %v1103_v16 }
 0x289   :  { %v1636_v38 = vpop.eup %1635  ;;  %1641 = vrcp.f32 %v1201_v48  ;;  %v1046_v39 = vpop.xlane.xlu0 %1045 }
 0x28a   :  { %1267 = vst.msk [vmem:[%s2414_s7 + $0x50] sm:$0xff] %vm1256_vm2, %v1636_v38  ;;  %1643 = vpow2.f32 %v1148_v37  ;;  %v1087_v41 = vadd.f32 %v2217_v18, %v1046_v39 }
 0x28c   :  { %v1120_v42 = vsub.f32 0.0, %v1087_v41 }
 0x28d   :  { %v998_v43 = vpop.xlane.xlu0 %997 }
 0x28e   :  { %v1182_v45 = vmul.f32 1.442695, %v1120_v42  ;;  %v1071_v46 = vadd.f32 %v2217_v18, %v998_v43 }
 0x28f   :  { %v1638_v47 = vpop.eup %1637 }
 0x290   :  { %v1640_v50 = vpop.eup %1639  ;;  %1284 = vst.msk [vmem:[%s2414_s7 + $0xd8] sm:$0xff] %vm1256_vm2, %v1638_v47  ;;  %1645 = vpow2.f32 %v1182_v45  ;;  %v1104_v51 = vsub.f32 0.0, %v1071_v46 }
 0x291   :  { %v1218_v44 = vadd.f32 1.0, %v1640_v50 }
 0x292   :  { %v1150_v52 = vmul.f32 1.442695, %v1104_v51 }
 0x293   :  { %v1642_v53 = vpop.eup %1641  ;;  %1647 = vrcp.f32 %v1218_v44 }
 0x294   :  { %v1644_v49 = vpop.eup %1643  ;;  %1268 = vst.msk [vmem:[%s2414_s7 + $0x58] sm:$0xff] %vm1256_vm2, %v1642_v53  ;;  %1649 = vpow2.f32 %v1150_v52 }
 0x295   :  { %v1202_v54 = vadd.f32 1.0, %v1644_v49 }
 0x297   :  { %1651 = vrcp.f32 %v1202_v54  ;;  %v1049_v55 = vpop.xlane.xlu1 %1048  ;;  %v1004_v56 = vpop.xlane.xlu0 %1003 }
 0x298   :  { %v1088_v57 = vadd.f32 %v2217_v18, %v1049_v55  ;;  %v1073_v58 = vadd.f32 %v2217_v18, %v1004_v56 }
 0x29a   :  { %v1646_v59 = vpop.eup %1645  ;;  %v1121_v60 = vsub.f32 0.0, %v1088_v57  ;;  %v1106_v61 = vsub.f32 0.0, %v1073_v58 }
 0x29b   :  { %v1219_v25 = vadd.f32 1.0, %v1646_v59  ;;  %v1001_v62 = vpop.xlane.xlu1 %1000 }
 0x29c   :  { %v1184_v63 = vmul.f32 1.442695, %v1121_v60  ;;  %v1154_v1 = vmul.f32 1.442695, %v1106_v61  ;;  %v1072_v2 = vadd.f32 %v2217_v18, %v1001_v62 }
 0x29d   :  { %v1648_v20 = vpop.eup %1647  ;;  %1653 = vrcp.f32 %v1219_v25 }
 0x29e   :  { %v1650_v3 = vpop.eup %1649  ;;  %1285 = vst.msk [vmem:[%s2414_s7 + $0xe0] sm:$0xff] %vm1256_vm2, %v1648_v20  ;;  %1655 = vpow2.f32 %v1184_v63  ;;  %v1105_v4 = vsub.f32 0.0, %v1072_v2 }
 0x29f   :  { %v1203_v6 = vadd.f32 1.0, %v1650_v3  ;;  %1657 = vpow2.f32 %v1154_v1 }
 0x2a0   :  { %v1152_v7 = vmul.f32 1.442695, %v1105_v4 }
 0x2a1   :  { %v1652_v0 = vpop.eup %1651  ;;  %1659 = vrcp.f32 %v1203_v6  ;;  %v1052_v8 = vpop.xlane.xlu0 %1051 }
 0x2a2   :  { %1269 = vst.msk [vmem:[%s2414_s7 + $0x60] sm:$0xff] %vm1256_vm2, %v1652_v0  ;;  %1661 = vpow2.f32 %v1152_v7  ;;  %v1089_v9 = vadd.f32 %v2217_v18, %v1052_v8 }
 0x2a4   :  { %v1122_v10 = vsub.f32 0.0, %v1089_v9 }
 0x2a6   :  { %v1186_v11 = vmul.f32 1.442695, %v1122_v10 }
 0x2a7   :  { %v1654_v13 = vpop.eup %1653 }
 0x2a8   :  { %v1656_v14 = vpop.eup %1655  ;;  %1286 = vst.msk [vmem:[%s2414_s7 + $0xe8] sm:$0xff] %vm1256_vm2, %v1654_v13  ;;  %1663 = vpow2.f32 %v1186_v11 }
 0x2a9   :  { %v1658_v15 = vpop.eup %1657  ;;  %v1220_v17 = vadd.f32 1.0, %v1656_v14 }
 0x2aa   :  { %v1205_v19 = vadd.f32 1.0, %v1658_v15 }
 0x2ab   :  { %v1660_v5 = vpop.eup %1659  ;;  %1665 = vrcp.f32 %v1220_v17  ;;  %v1007_v21 = vpop.xlane.xlu1 %1006 }
 0x2ac   :  { %v1662_v22 = vpop.eup %1661  ;;  %1270 = vst.msk [vmem:[%s2414_s7 + $0x68] sm:$0xff] %vm1256_vm2, %v1660_v5  ;;  %1667 = vrcp.f32 %v1205_v19  ;;  %v1074_v24 = vadd.f32 %v2217_v18, %v1007_v21 }
 0x2ad   :  { %v1204_v27 = vadd.f32 1.0, %v1662_v22 }
 0x2ae   :  { %v1107_v28 = vsub.f32 0.0, %v1074_v24 }
 0x2af   :  { %1669 = vrcp.f32 %v1204_v27  ;;  %v1055_v40 = vpop.xlane.xlu1 %1054 }
 0x2b0   :  { %v1156_v29 = vmul.f32 1.442695, %v1107_v28  ;;  %v1090_v30 = vadd.f32 %v2217_v18, %v1055_v40 }
 0x2b2   :  { %v1664_v31 = vpop.eup %1663  ;;  %1671 = vpow2.f32 %v1156_v29  ;;  %v1123_v26 = vsub.f32 0.0, %v1090_v30 }
 0x2b3   :  { %v1221_v32 = vadd.f32 1.0, %v1664_v31 }
 0x2b4   :  { %v1188_v23 = vmul.f32 1.442695, %v1123_v26 }
 0x2b5   :  { %v1666_v33 = vpop.eup %1665  ;;  %1673 = vrcp.f32 %v1221_v32 }
 0x2b6   :  { %v1668_v34 = vpop.eup %1667  ;;  %1287 = vst.msk [vmem:[%s2414_s7 + $0xf0] sm:$0xff] %vm1256_vm2, %v1666_v33  ;;  %1675 = vpow2.f32 %v1188_v23 }
 0x2b7   :  { %1272 = vst.msk [vmem:[%s2414_s7 + $0x78] sm:$0xff] %vm1256_vm2, %v1668_v34 }
 0x2b9   :  { %v1670_v18 = vpop.eup %1669 }
 0x2ba   :  { %1271 = vst.msk [vmem:[%s2414_s7 + $0x70] sm:$0xff] %vm1256_vm2, %v1670_v18 }
 0x2bc   :  { %v1672_v12 = vpop.eup %1671 }
 0x2bd   :  { %v1206_v35 = vadd.f32 1.0, %v1672_v12 }
 0x2bf   :  { %v1674_v36 = vpop.eup %1673  ;;  %1677 = vrcp.f32 %v1206_v35 }
 0x2c0   :  { %v1676_v16 = vpop.eup %1675  ;;  %1288 = vst.msk [vmem:[%s2414_s7 + $0xf8] sm:$0xff] %vm1256_vm2, %v1674_v36 }
 0x2c1   :  { %v1222_v48 = vadd.f32 1.0, %v1676_v16 }
 0x2c3   :  { %1679 = vrcp.f32 %v1222_v48 }
 0x2c9   :  { %v1678_v37 = vpop.eup %1677 }
 0x2ca   :  { %1273 = vst.msk [vmem:[%s2414_s7 + $0x80] sm:$0xff] %vm1256_vm2, %v1678_v37 }
 0x2cd   :  { %v1680_v38 = vpop.eup %1679 }
 0x2ce   :  { %1289 = vst.msk [vmem:[%s2414_s7 + $0x100] sm:$0xff] %vm1256_vm2, %v1680_v38 }

</bundles_post_ra>
